<compile_context>
chip_gen: v5e
topology: v5e:2x2
jax: 0.10.0
libtpu: 0.0.40
codegen_flags: <defaults>
</compile_context>

<pallas_src>
import math
import functools

import jax
import jax.numpy as jnp
from jax import lax
from jax.experimental import pallas as pl
from jax.experimental.pallas import tpu as pltpu


def _gelu(x, approximate):
    if approximate:
        # tanh GELU (PyTorch GELU(approximate='tanh')): transcendental on the
        # otherwise-idle EUP slot, only a handful of VALU ops per element.
        return jax.nn.gelu(x, approximate=True)
    # PyTorch nn.GELU() default: exact erf GELU (reference / exact path).
    return 0.5 * x * (1.0 + lax.erf(x * (1.0 / math.sqrt(2.0))))


def _pinghead_kernel(x_ref, w1_ref, b1_ref, w2_ref, b2_ref, w3_ref, b3_ref,
                     o_ref, *, act_dtype, approx_gelu):
    # x_ref: [TILE_N, H] tokens. Contract over H so the result keeps tokens on
    # the 128-wide lane axis ([M, TILE_N]); the implied RHS transpose runs on
    # the XLU, which has slack.
    h = lax.dot_general(
        w1_ref[...], x_ref[...],
        dimension_numbers=(((1,), (1,)), ((), ())),
        preferred_element_type=jnp.float32)                            # [M, TN] f32
    h = _gelu((h + b1_ref[...]).astype(act_dtype), approx_gelu)        # b1 lane-bcast

    if h.dtype != w2_ref.dtype:
        h = h.astype(w2_ref.dtype)
    h = jnp.dot(w2_ref[...], h, preferred_element_type=jnp.float32)    # [M, TN] f32
    h = _gelu((h + b2_ref[...]).astype(act_dtype), approx_gelu)

    if h.dtype != w3_ref.dtype:
        h = h.astype(w3_ref.dtype)
    y = jnp.dot(w3_ref[...], h, preferred_element_type=jnp.float32)    # [1, TN]
    y = y + b3_ref[0]                                                  # SMEM scalar
    o_ref[...] = y.astype(o_ref.dtype)                                 # lane-dense store


def _round_up(n, m):
    return ((n + m - 1) // m) * m


@functools.partial(
    jax.jit,
    static_argnames=("tile_n", "use_bf16_mxu", "approx_gelu", "bf16_activations"))
def pinghead_forward(x, params, tile_n=512, use_bf16_mxu=True,
                     approx_gelu=True, bf16_activations=None):
    """x: [B, L, H] -> [B, L]  (eval-mode PyTorch PingHead.forward).

    Defaults trade ~1e-2 absolute error for native-bf16 MXU throughput:
      use_bf16_mxu     -- bf16 matmul operands, f32 accumulation
      approx_gelu      -- tanh GELU (== PyTorch GELU(approximate='tanh'))
      bf16_activations -- GELU/bias math in bf16; auto-enabled on v6e/v7x only
    Pass use_bf16_mxu=False, approx_gelu=False for exact f32/erf semantics.
    """
    B, L, H = x.shape
    N = B * L
    w1, b1, w2, b2, w3, b3 = params
    M = w1.shape[0]

    if bf16_activations is None:
        # bf16 VPU/EUP exists on v6e / v7x but not v4 / v5e.
        kind = jax.devices()[0].device_kind.lower()
        bf16_activations = ("v6" in kind) or ("v7" in kind) or ("tpu7" in kind)

    mxu_dtype = jnp.bfloat16 if use_bf16_mxu else jnp.float32
    act_dtype = jnp.bfloat16 if (use_bf16_mxu and bf16_activations) else jnp.float32

    # Hoist all operand casts out of the kernel: no per-step VPU re-packing,
    # half the HBM/VMEM traffic for x / W1 / W2 / w3 in the bf16 path.
    x2d = x.reshape(N, H).astype(mxu_dtype)
    w1c = w1.astype(mxu_dtype)
    w2c = w2.astype(mxu_dtype)
    w3c = w3.astype(mxu_dtype)

    # Token tile (lane axis of the intermediates): big enough to amortize the
    # ~0.35us per-grid-step overhead, but keep >=2 grid steps when possible so
    # the "parallel" axis can span both v7x TensorCores (harmless on 1-TC chips).
    n_pad128 = _round_up(N, 128)
    tile_n = _round_up(max(tile_n, 128), 128)
    if n_pad128 >= 256:
        tile_n = min(tile_n, _round_up((N + 1) // 2, 128))
    tile_n = min(tile_n, n_pad128)
    N_pad = _round_up(N, tile_n)
    num_tiles = N_pad // tile_n
    if N_pad != N:
        x2d = jnp.pad(x2d, ((0, N_pad - N), (0, 0)))   # padded tail sliced off below

    kernel = functools.partial(_pinghead_kernel,
                               act_dtype=act_dtype, approx_gelu=approx_gelu)

    out = pl.pallas_call(
        kernel,
        out_shape=jax.ShapeDtypeStruct((1, N_pad), x.dtype),
        grid_spec=pltpu.PrefetchScalarGridSpec(
            num_scalar_prefetch=0,
            grid=(num_tiles,),
            in_specs=[
                pl.BlockSpec((tile_n, H), lambda i: (i, 0)),        # x tokens
                pl.BlockSpec((M, H), lambda i: (0, 0)),             # W1 [out, in]
                pl.BlockSpec((M, 1), lambda i: (0, 0)),             # b1 (column)
                pl.BlockSpec((M, M), lambda i: (0, 0)),             # W2 [out, in]
                pl.BlockSpec((M, 1), lambda i: (0, 0)),             # b2 (column)
                pl.BlockSpec((1, M), lambda i: (0, 0)),             # w3 (fc3.weight row)
                pl.BlockSpec(memory_space=pltpu.MemorySpace.SMEM),  # b3 scalar
            ],
            out_specs=pl.BlockSpec((1, tile_n), lambda i: (0, i)),  # lane-dense output
        ),
        compiler_params=pltpu.CompilerParams(
            dimension_semantics=("parallel",)),
    )(x2d, w1c, b1, w2c, b2, w3c, b3)

    return out[0, :N].reshape(B, L)


def init_pinghead_params(key, h_dim, mlp_dim=256, dtype=jnp.float32):
    """nn.Linear-style init; weights kept in PyTorch's native [out, in] layout."""
    ks = jax.random.split(key, 6)

    def linear(kw, kb, fan_in, fan_out):
        bound = 1.0 / math.sqrt(fan_in)
        w = jax.random.uniform(kw, (fan_out, fan_in), dtype, -bound, bound)
        b = jax.random.uniform(kb, (fan_out,), dtype, -bound, bound)
        return w, b

    w1, b1 = linear(ks[0], ks[1], h_dim, mlp_dim)
    w2, b2 = linear(ks[2], ks[3], mlp_dim, mlp_dim)
    w3, b3 = linear(ks[4], ks[5], mlp_dim, 1)
    return (w1, b1.reshape(mlp_dim, 1),
            w2, b2.reshape(mlp_dim, 1),
            w3,                           # fc3.weight as a [1, M] row
            b3)                           # scalar bias, shape (1,)


def pinghead_ref(x, params, approx_gelu=False):
    """Pure-JAX f32 reference (eval-mode PyTorch semantics)."""
    w1, b1, w2, b2, w3, b3 = params
    B, L, H = x.shape
    mm = functools.partial(jnp.matmul, precision=lax.Precision.HIGHEST)
    h = x.reshape(B * L, H)
    h = _gelu(mm(h, w1.T) + b1[:, 0], approx_gelu)
    h = _gelu(mm(h, w2.T) + b2[:, 0], approx_gelu)
    y = mm(h, w3.T)[:, 0] + b3[0]
    return y.reshape(B, L)


if __name__ == "__main__":
    key = jax.random.PRNGKey(0)
    k_x, k_p, k_x2 = jax.random.split(key, 3)

    B, L, H = 2, 8, 32
    MLP = 256
    params = init_pinghead_params(k_p, H, MLP)
    x = jax.random.normal(k_x, (B, L, H), dtype=jnp.float32)

    # 1) f32 operands + tanh GELU vs matching pure-JAX reference: tight check
    #    of the kernel plumbing itself.
    out_f32 = jax.block_until_ready(
        pinghead_forward(x, params, use_bf16_mxu=False, approx_gelu=True,
                         bf16_activations=False))
    ref_tanh = pinghead_ref(x, params, approx_gelu=True)
    assert out_f32.shape == (B, L), out_f32.shape
    err1 = float(jnp.max(jnp.abs(out_f32 - ref_tanh)))
    assert jnp.allclose(out_f32, ref_tanh, atol=1e-4, rtol=1e-4), \
        f"f32 path max abs err {err1}"

    # 2) Fast default path (bf16 MXU + tanh GELU) vs exact-erf f32 PyTorch
    #    reference: documents the precision trade-off of the shipped defaults.
    out_fast = jax.block_until_ready(pinghead_forward(x, params))
    ref_exact = pinghead_ref(x, params, approx_gelu=False)
    err2 = float(jnp.max(jnp.abs(out_fast - ref_exact)))
    assert jnp.allclose(out_fast, ref_exact, atol=5e-2, rtol=5e-2), \
        f"fast path max abs err {err2}"

    # 3) Multi-tile + ragged tail case (N = 280 -> two token tiles).
    B2, L2 = 4, 70
    x2 = jax.random.normal(k_x2, (B2, L2, H), dtype=jnp.float32)
    out2 = jax.block_until_ready(pinghead_forward(x2, params))
    ref2 = pinghead_ref(x2, params, approx_gelu=False)
    err3 = float(jnp.max(jnp.abs(out2 - ref2)))
    assert jnp.allclose(out2, ref2, atol=5e-2, rtol=5e-2), \
        f"multi-tile max abs err {err3}"

    print("KERNEL_OK")
</pallas_src>

<mosaic_0001>
module attributes {stable_mosaic.version = 11 : i64} {
  func.func @_pinghead_kernel(%arg0: i32, %arg1: memref<128x32xf32, #tpu.memory_space<vmem>>, %arg2: memref<256x32xf32, #tpu.memory_space<vmem>>, %arg3: memref<256x1xf32, #tpu.memory_space<vmem>>, %arg4: memref<256x256xf32, #tpu.memory_space<vmem>>, %arg5: memref<256x1xf32, #tpu.memory_space<vmem>>, %arg6: memref<1x256xf32, #tpu.memory_space<vmem>>, %arg7: memref<1xf32, #tpu.memory_space<smem>>, %arg8: memref<1x128xf32, #tpu.memory_space<vmem>>) attributes {dimension_semantics = [#tpu.dimension_semantics<parallel>], iteration_bounds = array<i64: 1>, scalar_prefetch = 0 : i64, scratch_operands = 0 : i64, tpu.core_type = #tpu.core_type<tc>, window_params = [{transform_indices = @transform_0, window_bounds = array<i64: 128, 32>}, {pipeline_mode = #tpu.pipeline_mode<synchronous>, transform_indices = @transform_1, window_bounds = array<i64: 256, 32>}, {pipeline_mode = #tpu.pipeline_mode<synchronous>, transform_indices = @transform_2, window_bounds = array<i64: 256, 1>}, {pipeline_mode = #tpu.pipeline_mode<synchronous>, transform_indices = @transform_3, window_bounds = array<i64: 256, 256>}, {pipeline_mode = #tpu.pipeline_mode<synchronous>, transform_indices = @transform_4, window_bounds = array<i64: 256, 1>}, {pipeline_mode = #tpu.pipeline_mode<synchronous>, transform_indices = @transform_5, window_bounds = array<i64: 1, 256>}, {transform_indices = @transform_6, window_bounds = array<i64: 1>}, {transform_indices = @transform_7, window_bounds = array<i64: 1, 128>}]} {
    %c0 = arith.constant 0 : index
    %c0_0 = arith.constant 0 : index
    %0 = vector.load %arg2[%c0, %c0_0] : memref<256x32xf32, #tpu.memory_space<vmem>>, vector<256x32xf32>
    %c0_1 = arith.constant 0 : index
    %c0_2 = arith.constant 0 : index
    %1 = vector.load %arg1[%c0_1, %c0_2] : memref<128x32xf32, #tpu.memory_space<vmem>>, vector<128x32xf32>
    %cst = arith.constant dense<0.000000e+00> : vector<256x128xf32>
    %2 = tpu.matmul %0, %1, %cst {dimension_numbers = #tpu.dot_dimension_numbers<[1], [1], [0], [0], [0, 0, 1, 0], [], []>} : vector<256x32xf32>, vector<128x32xf32>, vector<256x128xf32> -> vector<256x128xf32>
    %c0_3 = arith.constant 0 : index
    %c0_4 = arith.constant 0 : index
    %3 = vector.load %arg3[%c0_3, %c0_4] : memref<256x1xf32, #tpu.memory_space<vmem>>, vector<256x1xf32>
    %4 = vector.broadcast %3 : vector<256x1xf32> to vector<256x128xf32>
    %5 = arith.addf %2, %4 : vector<256x128xf32>
    %6 = arith.mulf %5, %5 : vector<256x128xf32>
    %7 = arith.mulf %5, %6 : vector<256x128xf32>
    %cst_5 = arith.constant 4.471500e-02 : f32
    %8 = vector.broadcast %cst_5 : f32 to vector<256x128xf32>
    %9 = arith.mulf %8, %7 : vector<256x128xf32>
    %10 = arith.addf %5, %9 : vector<256x128xf32>
    %cst_6 = arith.constant 0.797884583 : f32
    %11 = vector.broadcast %cst_6 : f32 to vector<256x128xf32>
    %12 = arith.mulf %11, %10 : vector<256x128xf32>
    %13 = math.tanh %12 : vector<256x128xf32>
    %cst_7 = arith.constant 1.000000e+00 : f32
    %14 = vector.broadcast %cst_7 : f32 to vector<256x128xf32>
    %15 = arith.addf %14, %13 : vector<256x128xf32>
    %cst_8 = arith.constant 5.000000e-01 : f32
    %16 = vector.broadcast %cst_8 : f32 to vector<256x128xf32>
    %17 = arith.mulf %16, %15 : vector<256x128xf32>
    %18 = arith.mulf %5, %17 : vector<256x128xf32>
    %c0_9 = arith.constant 0 : index
    %c0_10 = arith.constant 0 : index
    %19 = vector.load %arg4[%c0_9, %c0_10] : memref<256x256xf32, #tpu.memory_space<vmem>>, vector<256x256xf32>
    %cst_11 = arith.constant dense<0.000000e+00> : vector<256x128xf32>
    %20 = tpu.matmul %19, %18, %cst_11 {dimension_numbers = #tpu.dot_dimension_numbers<[1], [0], [0], [1], [0, 0, 1, 1], [], []>} : vector<256x256xf32>, vector<256x128xf32>, vector<256x128xf32> -> vector<256x128xf32>
    %c0_12 = arith.constant 0 : index
    %c0_13 = arith.constant 0 : index
    %21 = vector.load %arg5[%c0_12, %c0_13] : memref<256x1xf32, #tpu.memory_space<vmem>>, vector<256x1xf32>
    %22 = vector.broadcast %21 : vector<256x1xf32> to vector<256x128xf32>
    %23 = arith.addf %20, %22 : vector<256x128xf32>
    %24 = arith.mulf %23, %23 : vector<256x128xf32>
    %25 = arith.mulf %23, %24 : vector<256x128xf32>
    %cst_14 = arith.constant 4.471500e-02 : f32
    %26 = vector.broadcast %cst_14 : f32 to vector<256x128xf32>
    %27 = arith.mulf %26, %25 : vector<256x128xf32>
    %28 = arith.addf %23, %27 : vector<256x128xf32>
    %cst_15 = arith.constant 0.797884583 : f32
    %29 = vector.broadcast %cst_15 : f32 to vector<256x128xf32>
    %30 = arith.mulf %29, %28 : vector<256x128xf32>
    %31 = math.tanh %30 : vector<256x128xf32>
    %cst_16 = arith.constant 1.000000e+00 : f32
    %32 = vector.broadcast %cst_16 : f32 to vector<256x128xf32>
    %33 = arith.addf %32, %31 : vector<256x128xf32>
    %cst_17 = arith.constant 5.000000e-01 : f32
    %34 = vector.broadcast %cst_17 : f32 to vector<256x128xf32>
    %35 = arith.mulf %34, %33 : vector<256x128xf32>
    %36 = arith.mulf %23, %35 : vector<256x128xf32>
    %c0_18 = arith.constant 0 : index
    %c0_19 = arith.constant 0 : index
    %37 = vector.load %arg6[%c0_18, %c0_19] : memref<1x256xf32, #tpu.memory_space<vmem>>, vector<1x256xf32>
    %cst_20 = arith.constant dense<0.000000e+00> : vector<1x128xf32>
    %38 = tpu.matmul %37, %36, %cst_20 {dimension_numbers = #tpu.dot_dimension_numbers<[1], [0], [0], [1], [0, 0, 1, 1], [], []>} : vector<1x256xf32>, vector<256x128xf32>, vector<1x128xf32> -> vector<1x128xf32>
    %c0_21 = arith.constant 0 : index
    %39 = memref.load %arg7[%c0_21] : memref<1xf32, #tpu.memory_space<smem>>
    %40 = vector.broadcast %39 : f32 to vector<1x128xf32>
    %41 = arith.addf %38, %40 : vector<1x128xf32>
    %c0_22 = arith.constant 0 : index
    %c0_23 = arith.constant 0 : index
    %42 = vector.load %arg8[%c0_22, %c0_23] : memref<1x128xf32, #tpu.memory_space<vmem>>, vector<1x128xf32>
    tpu.vector_store %arg8[%c0_22, %c0_23], %41 {strides = array<i32>} : memref<1x128xf32, #tpu.memory_space<vmem>>, vector<1x128xf32>,
    return
  }
  func.func @transform_0(%arg0: i32) -> (i32, i32) {
    %c0_i32 = arith.constant 0 : i32
    %c0_i32_0 = arith.constant 0 : i32
    return %arg0, %c0_i32 : i32, i32
  }
  func.func @transform_1(%arg0: i32) -> (i32, i32) {
    %c0_i32 = arith.constant 0 : i32
    %c0_i32_0 = arith.constant 0 : i32
    %c0_i32_1 = arith.constant 0 : i32
    return %c0_i32, %c0_i32_0 : i32, i32
  }
  func.func @transform_2(%arg0: i32) -> (i32, i32) {
    %c0_i32 = arith.constant 0 : i32
    %c0_i32_0 = arith.constant 0 : i32
    %c0_i32_1 = arith.constant 0 : i32
    return %c0_i32, %c0_i32_0 : i32, i32
  }
  func.func @transform_3(%arg0: i32) -> (i32, i32) {
    %c0_i32 = arith.constant 0 : i32
    %c0_i32_0 = arith.constant 0 : i32
    %c0_i32_1 = arith.constant 0 : i32
    return %c0_i32, %c0_i32_0 : i32, i32
  }
  func.func @transform_4(%arg0: i32) -> (i32, i32) {
    %c0_i32 = arith.constant 0 : i32
    %c0_i32_0 = arith.constant 0 : i32
    %c0_i32_1 = arith.constant 0 : i32
    return %c0_i32, %c0_i32_0 : i32, i32
  }
  func.func @transform_5(%arg0: i32) -> (i32, i32) {
    %c0_i32 = arith.constant 0 : i32
    %c0_i32_0 = arith.constant 0 : i32
    %c0_i32_1 = arith.constant 0 : i32
    return %c0_i32, %c0_i32_0 : i32, i32
  }
  func.func @transform_6(%arg0: i32) -> i32 {
    %c0_i32 = arith.constant 0 : i32
    %c0_i32_0 = arith.constant 0 : i32
    return %c0_i32 : i32
  }
  func.func @transform_7(%arg0: i32) -> (i32, i32) {
    %c0_i32 = arith.constant 0 : i32
    %c0_i32_0 = arith.constant 0 : i32
    return %c0_i32, %arg0 : i32, i32
  }
}

</mosaic_0001>

<bundles_post_ra>
// kernel: squeeze.1
= control target key start
LH: loop header
LB: loop body
LE: loop exit
PB: predicated region body
PF: predicated region fallthrough
CT: control target
= control target key end

     0   :  { %s80_s0 = inlined_call_operand.vmem [shape: f32[16], index: 0, kind: input, shape index: {}]   ;;  %s81_s1 = inlined_call_operand.hbm [shape: f32[2,8], index: 1, kind: output, shape index: {}]  }
   0x1   :  { %v5_v0 = vld [vmem:[%s80_s0] sm:$0x1] }
   0x2   :  { %2 = vsyncpa [#allocation1], 0  ;;  %6 = vst [vmem:[#allocation3] sm:$0x1] %v5_v0  ;;  %vm8_vm0 = vcmask 64512   ;;  %s62_s0 = smov 120  }
   0x3   :  { %s63_s8 = smov [#allocation0]   ;;  %s27_s1 = sshll.u32 %s81_s1, 4  ;;  %s28_s1 = int_to_ptr.hbm [resolvable:$true] %s27_s1 }
   0x4   :  { %s25_s9 = sshll.u32 %s63_s8, 4  ;;  %s26_s9 = int_to_ptr.vmem [resolvable:$true] %s25_s9 }
   0x9   :  { %v10_v1 = vld [vmem:[#allocation3] sm:$0x1]  }
   0xa   :  { %v7_v2 = vld [vmem:[#allocation3] sm:$0x1]   ;;  %11 = vrot.lane.b32.xlu0 %v10_v1, %s62_s0 }
   0xb   :  { %9 = vst.msk [vmem:[#allocation2] sm:$0x1] %vm8_vm0, %v7_v2  }
  0x7c   :  { %v12_v3 = vpop.permute.xlu0 %11  }
  0x7d   :  { %15 = vst.msk [vmem:[#allocation2 + $0x1] sm:$0x1] %vm8_vm0, %v12_v3  }
  0x84   :  { %v18_v4 = vld [vmem:[#allocation2] sm:$0x3] }
  0x85   :  { %21 = vst [vmem:[#allocation0] sm:$0x3] %v18_v4 }
  0x86   :  { %30 = dma.vmem_to_hbm [thread:$0]  %s26_s9, 32, %s28_s1, [#allocation1]  }
  0x87   :  { %60 = dma.done.wait [#allocation1], 32  }
  0x88   :  { %61 = vsyncadd [#allocation1], 4294967264 }
  0x89   :  { %33 = vsyncpa [#allocation1], 1 }

// kernel: pinghead_forward.1
= control target key start
LH: loop header
LB: loop body
LE: loop exit
PB: predicated region body
PF: predicated region fallthrough
CT: control target
= control target key end

     0   :  { %vm267_vm0 = vcmask 261120   ;;  %v1864_v0 = vmov 0   ;;  %s3180_s2 = inlined_call_operand.vmem [shape: f32[256,1], index: 2, kind: input, shape index: {}]   ;;  %s3181_s0 = inlined_call_operand.vmem [shape: f32[128,32], index: 0, kind: input, shape index: {}]   ;;  %s3182_s1 = inlined_call_operand.vmem [shape: f32[256,32], index: 1, kind: input, shape index: {}]   ;;  %s3183_s4 = inlined_call_operand.vmem [shape: f32[256,1], index: 4, kind: input, shape index: {}]   ;;  %s3184_s3 = inlined_call_operand.vmem [shape: f32[256,256], index: 3, kind: input, shape index: {}]   ;;  %s3185_s5 = inlined_call_operand.vmem [shape: f32[1,256], index: 5, kind: input, shape index: {}]   ;;  %s3186_s6 = inlined_call_operand.<no memory space> [shape: f32[1], index: 6, kind: input, shape index: {}]   ;;  %s3187_s7 = inlined_call_operand.vmem [shape: f32[1,128], index: 7, kind: output, shape index: {}]  }
   0x1   :  { %1734 = vset.pattern.permute.xlu1 %v1864_v0  ;;  %v90_v1 = vld [vmem:[%s3180_s2 + $0x78] sm:$0xff]  ;;  %1733 = vset.pattern.permute.xlu0 %v1864_v0  ;;  %v73_v4 = vld [vmem:[%s3181_s0 + $0x70] sm:$0xff]  ;;  %v104_v5 = vld [vmem:[%s3180_s2 + $0xe8] sm:$0xff] }
   0x2   :  { %v74_v2 = vld [vmem:[%s3181_s0 + $0x78] sm:$0xff]  ;;  %184 = vperm.xlu1 %1734, %v90_v1   ;;  %1735 = vset.pattern.permute.xlu2 %v1864_v0  ;;  %v72_v6 = vld [vmem:[%s3181_s0 + $0x68] sm:$0xff]  ;;  %v105_v7 = vld [vmem:[%s3180_s2 + $0xf0] sm:$0xff] }
   0x3   :  { %v106_v3 = vld [vmem:[%s3180_s2 + $0xf8] sm:$0xff]  ;;  %1636 = vmatpush.xpose.msk.msra.mxu0 %vm267_vm0, %v74_v2  ;;  %1684 = vmatpush.xpose.msk.msra.mxu3 %vm267_vm0, %v74_v2  ;;  %v71_v8 = vld [vmem:[%s3181_s0 + $0x60] sm:$0xff]  ;;  %v88_v11 = vld [vmem:[%s3180_s2 + $0x68] sm:$0xff] }
   0x4   :  { %264 = vperm.xlu0 %1733, %v106_v3   ;;  %v102_v9 = vld [vmem:[%s3180_s2 + $0xd8] sm:$0xff]  ;;  %v69_v12 = vld [vmem:[%s3181_s0 + $0x50] sm:$0xff]  ;;  %v68_v14 = vld [vmem:[%s3181_s0 + $0x48] sm:$0xff] }
   0x5   :  { %v70_v10 = vld [vmem:[%s3181_s0 + $0x58] sm:$0xff]  ;;  %v101_v15 = vld [vmem:[%s3180_s2 + $0xd0] sm:$0xff]  ;;  %v67_v17 = vld [vmem:[%s3181_s0 + $0x40] sm:$0xff] }
   0x6   :  { %v86_v13 = vld [vmem:[%s3180_s2 + $0x58] sm:$0xff]  ;;  %v89_v16 = vld [vmem:[%s3180_s2 + $0x70] sm:$0xff]  ;;  %v99_v18 = vld [vmem:[%s3180_s2 + $0xc0] sm:$0xff] }
   0x7   :  { %1637 = vmatpush.xpose.msk.msra.mxu0 %vm267_vm0, %v73_v4  ;;  %1685 = vmatpush.xpose.msk.msra.mxu3 %vm267_vm0, %v73_v4  ;;  %v66_v19 = vld [vmem:[%s3181_s0 + $0x38] sm:$0xff]  ;;  %v85_v20 = vld [vmem:[%s3180_s2 + $0x50] sm:$0xff]  ;;  %v103_v21 = vld [vmem:[%s3180_s2 + $0xe0] sm:$0xff] }
   0x8   :  { %179 = vperm.xlu2 %1735, %v89_v16   ;;  %v65_v22 = vld [vmem:[%s3181_s0 + $0x30] sm:$0xff]  ;;  %v83_v23 = vld [vmem:[%s3180_s2 + $0x40] sm:$0xff]  ;;  %v64_v24 = vld [vmem:[%s3181_s0 + $0x28] sm:$0xff] }
   0x9   :  { %v98_v25 = vld [vmem:[%s3180_s2 + $0xb8] sm:$0xff]  ;;  %v87_v26 = vld [vmem:[%s3180_s2 + $0x60] sm:$0xff]  ;;  %v96_v28 = vld [vmem:[%s3180_s2 + $0xa8] sm:$0xff] }
   0xa   :  { %254 = vperm.xlu1 %1734, %v104_v5   ;;  %v63_v27 = vld [vmem:[%s3181_s0 + $0x20] sm:$0xff]  ;;  %v62_v29 = vld [vmem:[%s3181_s0 + $0x18] sm:$0xff]  ;;  %v100_v31 = vld [vmem:[%s3180_s2 + $0xc8] sm:$0xff] }
   0xb   :  { %1638 = vmatpush.xpose.msk.msra.mxu0 %vm267_vm0, %v72_v6  ;;  %1686 = vmatpush.xpose.msk.msra.mxu3 %vm267_vm0, %v72_v6  ;;  %v82_v30 = vld [vmem:[%s3180_s2 + $0x38] sm:$0xff]  ;;  %v61_v32 = vld [vmem:[%s3181_s0 + $0x10] sm:$0xff]  ;;  %v80_v33 = vld [vmem:[%s3180_s2 + $0x28] sm:$0xff] }
   0xc   :  { %259 = vperm.xlu0 %1733, %v105_v7   ;;  %v60_v34 = vld [vmem:[%s3181_s0 + $0x8] sm:$0xff]  ;;  %v95_v35 = vld [vmem:[%s3180_s2 + $0xa0] sm:$0xff]  ;;  %v93_v39 = vld [vmem:[%s3180_s2 + $0x90] sm:$0xff] }
   0xd   :  { %v84_v36 = vld [vmem:[%s3180_s2 + $0x48] sm:$0xff]  ;;  %v59_v37 = vld [vmem:[%s3181_s0] sm:$0xff]  ;;  %v97_v42 = vld [vmem:[%s3180_s2 + $0xb0] sm:$0xff] }
   0xe   :  { %v27_v38 = vld [vmem:[%s3182_s1] sm:$0xff]  ;;  %v28_v43 = vld [vmem:[%s3182_s1 + $0x8] sm:$0xff]  ;;  %v77_v44 = vld [vmem:[%s3180_s2 + $0x10] sm:$0xff] }
   0xf   :  { %1639 = vmatpush.xpose.msk.msra.mxu0 %vm267_vm0, %v71_v8  ;;  %1687 = vmatpush.xpose.msk.msra.mxu3 %vm267_vm0, %v71_v8  ;;  %v51_v40 = vld [vmem:[%s3182_s1 + $0xc0] sm:$0xff]  ;;  %v52_v45 = vld [vmem:[%s3182_s1 + $0xc8] sm:$0xff]  ;;  %v81_v47 = vld [vmem:[%s3180_s2 + $0x30] sm:$0xff] }
  0x10   :  { %249 = vperm.xlu2 %1735, %v103_v21   ;;  %v79_v41 = vld [vmem:[%s3180_s2 + $0x20] sm:$0xff]  ;;  %v92_v46 = vld [vmem:[%s3180_s2 + $0x88] sm:$0xff]  ;;  %v29_v48 = vld [vmem:[%s3182_s1 + $0x10] sm:$0xff] }
  0x11   :  { %v75_v49 = vld [vmem:[%s3180_s2] sm:$0xff]  ;;  %v53_v50 = vld [vmem:[%s3182_s1 + $0xd0] sm:$0xff]  ;;  %v76_v51 = vld [vmem:[%s3180_s2 + $0x8] sm:$0xff] }
  0x12   :  { %244 = vperm.xlu1 %1734, %v102_v9   ;;  %v94_v52 = vld [vmem:[%s3180_s2 + $0x98] sm:$0xff]  ;;  %v891_v55 = vld [vmem:[%s3183_s4 + $0x70] sm:$0xff]  ;;  %v890_v57 = vld [vmem:[%s3183_s4 + $0x68] sm:$0xff] }
  0x13   :  { %1640 = vmatpush.xpose.msk.msra.mxu0 %vm267_vm0, %v70_v10  ;;  %1688 = vmatpush.xpose.msk.msra.mxu3 %vm267_vm0, %v70_v10  ;;  %v30_v53 = vld [vmem:[%s3182_s1 + $0x18] sm:$0xff]  ;;  %v31_v58 = vld [vmem:[%s3182_s1 + $0x20] sm:$0xff]  ;;  %v32_v62 = vld [vmem:[%s3182_s1 + $0x28] sm:$0xff] }
  0x14   :  { %174 = vperm.xlu0 %1733, %v88_v11   ;;  %v54_v54 = vld [vmem:[%s3182_s1 + $0xd8] sm:$0xff]  ;;  %v55_v59 = vld [vmem:[%s3182_s1 + $0xe0] sm:$0xff]  ;;  %v56_v63 = vld [vmem:[%s3182_s1 + $0xe8] sm:$0xff] }
  0x15   :  { %v78_v56 = vld [vmem:[%s3180_s2 + $0x18] sm:$0xff]  ;;  %v907_v0 = vld [vmem:[%s3183_s4 + $0xf0] sm:$0xff]  ;;  %v91_v1 = vld [vmem:[%s3180_s2 + $0x80] sm:$0xff] }
  0x16   :  { %v888_v60 = vld [vmem:[%s3183_s4 + $0x58] sm:$0xff]  ;;  %v886_v2 = vld [vmem:[%s3183_s4 + $0x48] sm:$0xff]  ;;  %v33_v3 = vld [vmem:[%s3182_s1 + $0x30] sm:$0xff] }
  0x17   :  { %1641 = vmatpush.xpose.msk.msra.mxu0 %vm267_vm0, %v69_v12  ;;  %1689 = vmatpush.xpose.msk.msra.mxu3 %vm267_vm0, %v69_v12  ;;  %v908_v61 = vld [vmem:[%s3183_s4 + $0xf8] sm:$0xff]  ;;  %v57_v4 = vld [vmem:[%s3182_s1 + $0xf0] sm:$0xff]  ;;  %v885_v5 = vld [vmem:[%s3183_s4 + $0x40] sm:$0xff] }
  0x18   :  { %169 = vperm.xlu2 %1735, %v87_v26   ;;  %v892_v6 = vld [vmem:[%s3183_s4 + $0x78] sm:$0xff]  ;;  %v905_v7 = vld [vmem:[%s3183_s4 + $0xe0] sm:$0xff]  ;;  %v883_v12 = vld [vmem:[%s3183_s4 + $0x30] sm:$0xff] }
  0x19   :  { %v34_v8 = vld [vmem:[%s3182_s1 + $0x38] sm:$0xff]  ;;  %v889_v11 = vld [vmem:[%s3183_s4 + $0x60] sm:$0xff]  ;;  %v902_v16 = vld [vmem:[%s3183_s4 + $0xc8] sm:$0xff] }
  0x1a   :  { %164 = vperm.xlu1 %1734, %v86_v13   ;;  %v58_v9 = vld [vmem:[%s3182_s1 + $0xf8] sm:$0xff]  ;;  %v35_v13 = vld [vmem:[%s3182_s1 + $0x40] sm:$0xff]  ;;  %v37_v21 = vld [vmem:[%s3182_s1 + $0x50] sm:$0xff] }
  0x1b   :  { %1642 = vmatpush.xpose.msk.msra.mxu0 %vm267_vm0, %v68_v14  ;;  %1690 = vmatpush.xpose.msk.msra.mxu3 %vm267_vm0, %v68_v14  ;;  %v904_v10 = vld [vmem:[%s3183_s4 + $0xd8] sm:$0xff]  ;;  %v882_v14 = vld [vmem:[%s3183_s4 + $0x28] sm:$0xff] }
  0x1c   :  { %239 = vperm.xlu0 %1733, %v101_v15   ;;  %v887_v15 = vld [vmem:[%s3183_s4 + $0x50] sm:$0xff]  ;;  %v898_v26 = vld [vmem:[%s3183_s4 + $0xa8] sm:$0xff] }
  0x1f   :  { %1643 = vmatpush.xpose.msk.msra.mxu0 %vm267_vm0, %v67_v17  ;;  %1691 = vmatpush.xpose.msk.msra.mxu3 %vm267_vm0, %v67_v17  ;;  %v36_v17 = vld [vmem:[%s3182_s1 + $0x48] sm:$0xff] }
  0x20   :  { %234 = vperm.xlu2 %1735, %v100_v31   ;;  %v881_v31 = vld [vmem:[%s3183_s4 + $0x20] sm:$0xff] }
  0x22   :  { %229 = vperm.xlu1 %1734, %v99_v18   ;;  %v901_v18 = vld [vmem:[%s3183_s4 + $0xc0] sm:$0xff] }
  0x23   :  { %1644 = vmatpush.xpose.msk.msra.mxu0 %vm267_vm0, %v66_v19  ;;  %1692 = vmatpush.xpose.msk.msra.mxu3 %vm267_vm0, %v66_v19  ;;  %v906_v19 = vld [vmem:[%s3183_s4 + $0xe8] sm:$0xff] }
  0x24   :  { %159 = vperm.xlu0 %1733, %v85_v20   ;;  %v880_v20 = vld [vmem:[%s3183_s4 + $0x18] sm:$0xff] }
  0x27   :  { %1645 = vmatpush.xpose.msk.msra.mxu0 %vm267_vm0, %v65_v22  ;;  %1693 = vmatpush.xpose.msk.msra.mxu3 %vm267_vm0, %v65_v22  ;;  %v879_v22 = vld [vmem:[%s3183_s4 + $0x10] sm:$0xff] }
  0x28   :  { %154 = vperm.xlu2 %1735, %v84_v36   ;;  %v41_v36 = vld [vmem:[%s3182_s1 + $0x70] sm:$0xff] }
  0x2a   :  { %149 = vperm.xlu1 %1734, %v83_v23   ;;  %v884_v23 = vld [vmem:[%s3183_s4 + $0x38] sm:$0xff] }
  0x2b   :  { %1646 = vmatpush.xpose.msk.msra.mxu0 %vm267_vm0, %v64_v24  ;;  %1694 = vmatpush.xpose.msk.msra.mxu3 %vm267_vm0, %v64_v24  ;;  %v899_v24 = vld [vmem:[%s3183_s4 + $0xb0] sm:$0xff] }
  0x2c   :  { %224 = vperm.xlu0 %1733, %v98_v25   ;;  %v38_v25 = vld [vmem:[%s3182_s1 + $0x58] sm:$0xff] }
  0x2f   :  { %1647 = vmatpush.xpose.msk.msra.mxu0 %vm267_vm0, %v63_v27  ;;  %1695 = vmatpush.xpose.msk.msra.mxu3 %vm267_vm0, %v63_v27  ;;  %v903_v27 = vld [vmem:[%s3183_s4 + $0xd0] sm:$0xff] }
  0x30   :  { %219 = vperm.xlu2 %1735, %v97_v42   ;;  %v894_v42 = vld [vmem:[%s3183_s4 + $0x88] sm:$0xff] }
  0x32   :  { %214 = vperm.xlu1 %1734, %v96_v28   ;;  %v877_v28 = vld [vmem:[%s3183_s4] sm:$0xff] }
  0x33   :  { %1648 = vmatpush.xpose.msk.msra.mxu0 %vm267_vm0, %v62_v29  ;;  %1696 = vmatpush.xpose.msk.msra.mxu3 %vm267_vm0, %v62_v29  ;;  %v39_v29 = vld [vmem:[%s3182_s1 + $0x60] sm:$0xff] }
  0x34   :  { %144 = vperm.xlu0 %1733, %v82_v30   ;;  %v896_v30 = vld [vmem:[%s3183_s4 + $0x98] sm:$0xff] }
  0x37   :  { %1649 = vmatpush.xpose.msk.msra.mxu0 %vm267_vm0, %v61_v32  ;;  %1697 = vmatpush.xpose.msk.msra.mxu3 %vm267_vm0, %v61_v32  ;;  %v895_v32 = vld [vmem:[%s3183_s4 + $0x90] sm:$0xff] }
  0x38   :  { %139 = vperm.xlu2 %1735, %v81_v47  }
  0x3a   :  { %134 = vperm.xlu1 %1734, %v80_v33   ;;  %v40_v33 = vld [vmem:[%s3182_s1 + $0x68] sm:$0xff] }
  0x3b   :  { %1650 = vmatpush.xpose.msk.msra.mxu0 %vm267_vm0, %v60_v34  ;;  %1698 = vmatpush.xpose.msk.msra.mxu3 %vm267_vm0, %v60_v34  ;;  %v893_v34 = vld [vmem:[%s3183_s4 + $0x80] sm:$0xff] }
  0x3c   :  { %209 = vperm.xlu0 %1733, %v95_v35   ;;  %v900_v35 = vld [vmem:[%s3183_s4 + $0xb8] sm:$0xff] }
  0x3f   :  { %1651 = vmatpush.xpose.msk.msra.mxu0 %vm267_vm0, %v59_v37  ;;  %1699 = vmatpush.xpose.msk.msra.mxu3 %vm267_vm0, %v59_v37  ;;  %v878_v37 = vld [vmem:[%s3183_s4 + $0x8] sm:$0xff] }
  0x40   :  { %204 = vperm.xlu2 %1735, %v94_v52  }
  0x42   :  { %1652 = vmatmul.msk.f32.vlgmr.msra.gmra.mxu0 %vm267_vm0, %v27_v38  ;;  %199 = vperm.xlu1 %1734, %v93_v39   ;;  %v42_v38 = vld [vmem:[%s3182_s1 + $0x78] sm:$0xff]  ;;  %v897_v39 = vld [vmem:[%s3183_s4 + $0xa0] sm:$0xff] }
  0x43   :  { %1676 = vmatmul.msk.f32.vlgmr.msra.gmra.mxu3 %vm267_vm0, %v51_v40 }
  0x44   :  { %129 = vperm.xlu0 %1733, %v79_v41   ;;  %v43_v41 = vld [vmem:[%s3182_s1 + $0x80] sm:$0xff] }
  0x48   :  { %124 = vperm.xlu2 %1735, %v78_v56  }
  0x4a   :  { %1653 = vmatmul.msk.f32.gmra.mxu0 %vm267_vm0, %v28_v43  ;;  %119 = vperm.xlu1 %1734, %v77_v44  }
  0x4b   :  { %1677 = vmatmul.msk.f32.gmra.mxu3 %vm267_vm0, %v52_v45  ;;  %v44_v45 = vld [vmem:[%s3182_s1 + $0x88] sm:$0xff] }
  0x4c   :  { %194 = vperm.xlu0 %1733, %v92_v46  }
  0x50   :  { %189 = vperm.xlu2 %1735, %v91_v1  }
  0x52   :  { %1654 = vmatmul.msk.f32.gmra.mxu0 %vm267_vm0, %v29_v48  ;;  %109 = vperm.xlu1 %1734, %v75_v49   ;;  %v45_v48 = vld [vmem:[%s3182_s1 + $0x90] sm:$0xff] }
  0x53   :  { %1678 = vmatmul.msk.f32.gmra.mxu3 %vm267_vm0, %v53_v50 }
  0x54   :  { %114 = vperm.xlu0 %1733, %v76_v51  }
  0x58   :  { %986 = vperm.xlu2 %1735, %v892_v6   ;;  %v49_v6 = vld [vmem:[%s3182_s1 + $0xb0] sm:$0xff] }
  0x5a   :  { %1655 = vmatmul.msk.f32.gmra.mxu0 %vm267_vm0, %v30_v53  ;;  %976 = vperm.xlu1 %1734, %v890_v57   ;;  %v46_v53 = vld [vmem:[%s3182_s1 + $0x98] sm:$0xff] }
  0x5b   :  { %1679 = vmatmul.msk.f32.gmra.mxu3 %vm267_vm0, %v54_v54 }
  0x5c   :  { %981 = vperm.xlu0 %1733, %v891_v55  }
  0x60   :  { %971 = vperm.xlu2 %1735, %v889_v11  }
  0x62   :  { %1656 = vmatmul.msk.f32.gmra.mxu0 %vm267_vm0, %v31_v58  ;;  %1066 = vperm.xlu1 %1734, %v908_v61   ;;  %v2298_v54 = vpop.permute.xlu2 %179  ;;  %v47_v58 = vld [vmem:[%s3182_s1 + $0xa0] sm:$0xff] }
  0x63   :  { %1680 = vmatmul.msk.f32.gmra.mxu3 %vm267_vm0, %v55_v59 }
  0x64   :  { %966 = vperm.xlu0 %1733, %v888_v60  }
  0x68   :  { %961 = vperm.xlu2 %1735, %v887_v15  }
  0x6a   :  { %1657 = vmatmul.msk.f32.gmra.mxu0 %vm267_vm0, %v32_v62  ;;  %956 = vperm.xlu1 %1734, %v886_v2   ;;  %v250_v60 = vpop.permute.xlu2 %249 }
  0x6b   :  { %1681 = vmatmul.msk.f32.gmra.mxu3 %vm267_vm0, %v56_v63 }
  0x6c   :  { %1061 = vperm.xlu0 %1733, %v907_v0   ;;  %v48_v0 = vld [vmem:[%s3182_s1 + $0xa8] sm:$0xff] }
  0x70   :  { %1056 = vperm.xlu2 %1735, %v906_v19   ;;  %v50_v19 = vld [vmem:[%s3182_s1 + $0xb8] sm:$0xff] }
  0x72   :  { %1658 = vmatmul.msk.f32.gmra.mxu0 %vm267_vm0, %v33_v3  ;;  %1051 = vperm.xlu1 %1734, %v905_v7   ;;  %v2315_v2 = vpop.permute.xlu2 %169 }
  0x73   :  { %1682 = vmatmul.msk.f32.gmra.mxu3 %vm267_vm0, %v57_v4 }
  0x74   :  { %951 = vperm.xlu0 %1733, %v885_v5   ;;  %v2290_v49 = vpop.permute.xlu1 %184 }
  0x76   :  { %v265_v50 = vpop.permute.xlu0 %264 }
  0x78   :  { %946 = vperm.xlu2 %1735, %v884_v23  }
  0x7a   :  { %1659 = vmatmul.msk.f32.gmra.mxu0 %vm267_vm0, %v34_v8  ;;  %941 = vperm.xlu1 %1734, %v883_v12  }
  0x7b   :  { %1683 = vmatmul.msk.f32.gmra.mxu3 %vm267_vm0, %v58_v9 }
  0x7c   :  { %1046 = vperm.xlu0 %1733, %v904_v10   ;;  %v255_v55 = vpop.permute.xlu1 %254 }
  0x7e   :  { %v260_v59 = vpop.permute.xlu0 %259 }
  0x80   :  { %1041 = vperm.xlu2 %1735, %v903_v27  }
  0x82   :  { %1660 = vmatmul.msk.f32.gmra.mxu0 %vm267_vm0, %v35_v13  ;;  %1036 = vperm.xlu1 %1734, %v902_v16  }
  0x84   :  { %936 = vperm.xlu0 %1733, %v882_v14   ;;  %v245_v61 = vpop.permute.xlu1 %244  ;;  %v235_v14 = vpop.permute.xlu2 %234 }
  0x86   :  { %v2312_v1 = vpop.permute.xlu0 %174 }
  0x88   :  { %931 = vperm.xlu2 %1735, %v881_v31  }
  0x8a   :  { %1661 = vmatmul.msk.f32.gmra.mxu0 %vm267_vm0, %v36_v17  ;;  %926 = vperm.xlu1 %1734, %v880_v20  }
  0x8c   :  { %1031 = vperm.xlu0 %1733, %v901_v18   ;;  %v2317_v3 = vpop.permute.xlu1 %164 }
  0x8e   :  { %v240_v11 = vpop.permute.xlu0 %239 }
  0x90   :  { %1026 = vperm.xlu2 %1735, %v900_v35  }
  0x92   :  { %1662 = vmatmul.msk.f32.gmra.mxu0 %vm267_vm0, %v37_v21  ;;  %1021 = vperm.xlu1 %1734, %v899_v24  }
  0x94   :  { %921 = vperm.xlu0 %1733, %v879_v22   ;;  %v230_v22 = vpop.permute.xlu1 %229 }
  0x98   :  { %916 = vperm.xlu2 %1735, %v878_v37  }
  0x9a   :  { %1663 = vmatmul.msk.f32.gmra.mxu0 %vm267_vm0, %v38_v25  ;;  %911 = vperm.xlu1 %1734, %v877_v28  }
  0x9c   :  { %1016 = vperm.xlu0 %1733, %v898_v26  }
  0xa0   :  { %1011 = vperm.xlu2 %1735, %v897_v39  }
  0xa2   :  { %1664 = vmatmul.msk.f32.gmra.mxu0 %vm267_vm0, %v39_v29  ;;  %1001 = vperm.xlu1 %1734, %v895_v32  }
  0xa4   :  { %1006 = vperm.xlu0 %1733, %v896_v30  }
  0xa8   :  { %996 = vperm.xlu2 %1735, %v894_v42  }
  0xaa   :  { %1665 = vmatmul.msk.f32.gmra.mxu0 %vm267_vm0, %v40_v33 }
  0xac   :  { %991 = vperm.xlu0 %1733, %v893_v34  }
  0xb2   :  { %1666 = vmatmul.msk.f32.gmra.mxu0 %vm267_vm0, %v41_v36 }
  0xba   :  { %1667 = vmatmul.msk.f32.gmra.mxu0 %vm267_vm0, %v42_v38 }
  0xbf   :  { %v2270_v40 = vpop.f32.mrf.mxu0 }
  0xc2   :  { %1668 = vmatmul.msk.f32.gmra.mxu0 %vm267_vm0, %v43_v41 }
  0xc6   :  { %v501_v43 = vpop.f32.mrf.mxu3 }
  0xc7   :  { %v2279_v44 = vpop.f32.mrf.mxu0  ;;  %v2350_v24 = vadd.f32 %v501_v43, %v230_v22 }
  0xc9   :  { %v549_v32 = vmul.f32 %v2350_v24, %v2350_v24 }
  0xca   :  { %1669 = vmatmul.msk.f32.gmra.mxu0 %vm267_vm0, %v44_v45 }
  0xcb   :  { %v581_v45 = vmul.f32 %v549_v32, %v2350_v24 }
  0xce   :  { %v504_v46 = vpop.f32.mrf.mxu3 }
  0xcf   :  { %v2285_v47 = vpop.f32.mrf.mxu0  ;;  %v2339_v17 = vadd.f32 %v504_v46, %v235_v14 }
  0xd1   :  { %v550_v28 = vmul.f32 %v2339_v17, %v2339_v17 }
  0xd2   :  { %1670 = vmatmul.msk.f32.gmra.mxu0 %vm267_vm0, %v45_v48 }
  0xd3   :  { %v582_v37 = vmul.f32 %v550_v28, %v2339_v17 }
  0xd6   :  { %v507_v51 = vpop.f32.mrf.mxu3 }
  0xd7   :  { %v2293_v52 = vpop.f32.mrf.mxu0  ;;  %v2335_v13 = vadd.f32 %v507_v51, %v240_v11 }
  0xd9   :  { %v551_v25 = vmul.f32 %v2335_v13, %v2335_v13 }
  0xda   :  { %1671 = vmatmul.msk.f32.gmra.mxu0 %vm267_vm0, %v46_v53  ;;  %v2371_v53 = vpop.permute.xlu0 %159 }
  0xdb   :  { %v583_v33 = vmul.f32 %v551_v25, %v2335_v13 }
  0xdd   :  { %v615_v51 = vmul.f32 0.044715, %v583_v33 }
  0xde   :  { %v510_v56 = vpop.f32.mrf.mxu3 }
  0xdf   :  { %v2301_v57 = vpop.f32.mrf.mxu0  ;;  %v2328_v9 = vadd.f32 %v510_v56, %v245_v61  ;;  %v647_v61 = vadd.f32 %v615_v51, %v2335_v13 }
  0xe1   :  { %v552_v15 = vmul.f32 %v2328_v9, %v2328_v9 }
  0xe2   :  { %1672 = vmatmul.msk.f32.gmra.mxu0 %vm267_vm0, %v47_v58 }
  0xe3   :  { %v584_v27 = vmul.f32 %v552_v15, %v2328_v9 }
  0xe5   :  { %v616_v36 = vmul.f32 0.044715, %v584_v27 }
  0xe6   :  { %v513_v62 = vpop.f32.mrf.mxu3 }
  0xe7   :  { %v2307_v63 = vpop.f32.mrf.mxu0  ;;  %v2326_v8 = vadd.f32 %v513_v62, %v250_v60  ;;  %v613_v62 = vmul.f32 0.044715, %v581_v45 }
  0xe9   :  { %v553_v12 = vmul.f32 %v2326_v8, %v2326_v8  ;;  %v645_v14 = vadd.f32 %v613_v62, %v2350_v24 }
  0xea   :  { %1673 = vmatmul.msk.f32.gmra.mxu0 %vm267_vm0, %v48_v0 }
  0xeb   :  { %v585_v23 = vmul.f32 %v553_v12, %v2326_v8  ;;  %v679_v12 = vmul.f32 0.7978846, %v647_v61  ;;  %v677_v22 = vmul.f32 0.7978846, %v645_v14 }
  0xed   :  { %v617_v31 = vmul.f32 0.044715, %v585_v23  ;;  %v2381_v23 = vpop.permute.xlu1 %149 }
  0xee   :  { %v516_v4 = vpop.f32.mrf.mxu3 }
  0xef   :  { %v2319_v5 = vpop.f32.mrf.mxu0  ;;  %v2324_v7 = vadd.f32 %v516_v4, %v255_v55  ;;  %v649_v43 = vadd.f32 %v617_v31, %v2326_v8  ;;  %v648_v55 = vadd.f32 %v616_v36, %v2328_v9  ;;  %v155_v31 = vpop.permute.xlu2 %154 }
  0xf1   :  { %v554_v10 = vmul.f32 %v2324_v7, %v2324_v7  ;;  %v681_v60 = vmul.f32 0.7978846, %v649_v43  ;;  %v680_v0 = vmul.f32 0.7978846, %v648_v55 }
  0xf2   :  { %1674 = vmatmul.msk.f32.gmra.mxu0 %vm267_vm0, %v49_v6 }
  0xf3   :  { %v586_v20 = vmul.f32 %v554_v10, %v2324_v7 }
  0xf5   :  { %v618_v30 = vmul.f32 0.044715, %v586_v20 }
  0xf6   :  { %v519_v16 = vpop.f32.mrf.mxu3 }
  0xf7   :  { %v2341_v18 = vpop.f32.mrf.mxu0  ;;  %v2347_v21 = vadd.f32 %v519_v16, %v260_v59  ;;  %v650_v42 = vadd.f32 %v618_v30, %v2324_v7  ;;  %v614_v59 = vmul.f32 0.044715, %v582_v37  ;;  %v2398_v62 = vpop.permute.xlu2 %219 }
  0xf9   :  { %v555_v26 = vmul.f32 %v2347_v21, %v2347_v21  ;;  %v682_v58 = vmul.f32 0.7978846, %v650_v42  ;;  %v646_v10 = vadd.f32 %v614_v59, %v2339_v17 }
  0xfa   :  { %1675 = vmatmul.msk.f32.gmra.mxu0 %vm267_vm0, %v50_v19  ;;  %v2379_v19 = vpop.permute.xlu0 %224 }
  0xfb   :  { %v587_v29 = vmul.f32 %v555_v26, %v2347_v21  ;;  %v678_v16 = vmul.f32 0.7978846, %v646_v10 }
  0xfd   :  { %v619_v34 = vmul.f32 0.044715, %v587_v29 }
  0xfe   :  { %v522_v35 = vpop.f32.mrf.mxu3 }
  0xff   :  { %v2365_v38 = vpop.f32.mrf.mxu0  ;;  %v523_v39 = vadd.f32 %v522_v35, %v265_v50  ;;  %v651_v41 = vadd.f32 %v619_v34, %v2347_v21 }
 0x101   :  { %v556_v46 = vmul.f32 %v523_v39, %v523_v39  ;;  %v683_v48 = vmul.f32 0.7978846, %v651_v41 }
 0x102   :  { %v145_v43 = vpop.permute.xlu0 %144 }
 0x103   :  { %v588_v56 = vmul.f32 %v556_v46, %v523_v39  ;;  %1736 = vtanh.f32 %v683_v48 }
 0x104   :  { %1738 = vtanh.f32 %v682_v58  ;;  %v2388_v58 = vpop.permute.xlu1 %214 }
 0x105   :  { %v620_v50 = vmul.f32 0.044715, %v588_v56  ;;  %1740 = vtanh.f32 %v681_v60 }
 0x106   :  { %1742 = vtanh.f32 %v680_v0 }
 0x107   :  { %v2375_v4 = vpop.f32.mrf.mxu0  ;;  %v652_v6 = vadd.f32 %v620_v50, %v523_v39 }
 0x109   :  { %v684_v11 = vmul.f32 0.7978846, %v652_v6  ;;  %v1737_v15 = vpop.eup %1736 }
 0x10a   :  { %v1739_v20 = vpop.eup %1738  ;;  %v747_v25 = vadd.f32 1.0, %v1737_v15  ;;  %v140_v15 = vpop.permute.xlu2 %139 }
 0x10b   :  { %1744 = vtanh.f32 %v684_v11  ;;  %v1741_v26 = vpop.eup %1740  ;;  %v746_v29 = vadd.f32 1.0, %v1739_v20 }
 0x10c   :  { %1746 = vtanh.f32 %v679_v12  ;;  %v1743_v28 = vpop.eup %1742  ;;  %v779_v33 = vmul.f32 0.5, %v747_v25  ;;  %v745_v34 = vadd.f32 1.0, %v1741_v26  ;;  %v2408_v12 = vpop.permute.xlu0 %209 }
 0x10d   :  { %1748 = vtanh.f32 %v678_v16  ;;  %v778_v37 = vmul.f32 0.5, %v746_v29  ;;  %v744_v41 = vadd.f32 1.0, %v1743_v28  ;;  %v135_v14 = vpop.permute.xlu1 %134 }
 0x10e   :  { %1750 = vtanh.f32 %v677_v22  ;;  %v2386_v46 = vmul.f32 %v779_v33, %v2347_v21  ;;  %v777_v48 = vmul.f32 0.5, %v745_v34 }
 0x10f   :  { %v459_v27 = vpop.f32.mrf.mxu0  ;;  %v2392_v59 = vmul.f32 %v778_v37, %v2324_v7  ;;  %v776_v60 = vmul.f32 0.5, %v744_v41 }
 0x111   :  { %v1745_v30 = vpop.eup %1744  ;;  %v2402_v0 = vmul.f32 %v776_v60, %v2328_v9 }
 0x112   :  { %v748_v32 = vadd.f32 1.0, %v1745_v30  ;;  %v1747_v35 = vpop.eup %1746  ;;  %v2435_v29 = vpop.permute.xlu2 %204  ;;  %v2444_v30 = vadd.f32 %v2375_v4, %v155_v31 }
 0x113   :  { %v1749_v42 = vpop.eup %1748  ;;  %v743_v51 = vadd.f32 1.0, %v1747_v35 }
 0x114   :  { %v780_v36 = vmul.f32 0.5, %v748_v32  ;;  %v1751_v55 = vpop.eup %1750  ;;  %v742_v50 = vadd.f32 1.0, %v1749_v42  ;;  %v130_v16 = vpop.permute.xlu0 %129 }
 0x115   :  { %v775_v21 = vmul.f32 0.5, %v743_v51  ;;  %v741_v61 = vadd.f32 1.0, %v1751_v55 }
 0x116   :  { %v2383_v45 = vmul.f32 %v780_v36, %v523_v39  ;;  %v2396_v39 = vmul.f32 %v777_v48, %v2326_v8  ;;  %v774_v6 = vmul.f32 0.5, %v742_v50  ;;  %v534_v36 = vmul.f32 %v2444_v30, %v2444_v30 }
 0x117   :  { %v462_v56 = vpop.f32.mrf.mxu0  ;;  %v2406_v7 = vmul.f32 %v775_v21, %v2335_v13  ;;  %v773_v10 = vmul.f32 0.5, %v741_v61  ;;  %v2468_v48 = vadd.f32 %v2319_v5, %v140_v15 }
 0x118   :  { %1182 = vmatpush.msra.mxu2 %v2383_v45  ;;  %v2412_v8 = vmul.f32 %v774_v6, %v2339_v17  ;;  %v2426_v17 = vpop.permute.xlu1 %199  ;;  %v2429_v25 = vadd.f32 %v462_v56, %v2317_v3  ;;  %v2478_v56 = vadd.f32 %v2307_v63, %v135_v14  ;;  %v566_v50 = vmul.f32 %v534_v36, %v2444_v30 }
 0x119   :  { %v2416_v9 = vmul.f32 %v773_v10, %v2350_v24  ;;  %v531_v10 = vmul.f32 %v2468_v48, %v2468_v48 }
 0x11a   :  { %1183 = vmatpush.msra.mxu2 %v2386_v46  ;;  %v536_v3 = vmul.f32 %v2429_v25, %v2429_v25  ;;  %v125_v5 = vpop.permute.xlu2 %124 }
 0x11c   :  { %1184 = vmatpush.msra.mxu2 %v2392_v59  ;;  %v2452_v35 = vpop.permute.xlu0 %194  ;;  %v568_v37 = vmul.f32 %v536_v3, %v2429_v25 }
 0x11e   :  { %1185 = vmatpush.msra.mxu2 %v2396_v39  ;;  %v600_v6 = vmul.f32 0.044715, %v568_v37 }
 0x11f   :  { %v465_v11 = vpop.f32.mrf.mxu0 }
 0x120   :  { %1186 = vmatpush.msra.mxu2 %v2402_v0  ;;  %v2424_v22 = vadd.f32 %v465_v11, %v2315_v2  ;;  %v120_v31 = vpop.permute.xlu1 %119 }
 0x122   :  { %1187 = vmatpush.msra.mxu2 %v2406_v7  ;;  %v537_v26 = vmul.f32 %v2424_v22, %v2424_v22 }
 0x124   :  { %1188 = vmatpush.msra.mxu2 %v2412_v8  ;;  %v569_v34 = vmul.f32 %v537_v26, %v2424_v22  ;;  %v530_v26 = vmul.f32 %v2478_v56, %v2478_v56 }
 0x126   :  { %1189 = vmatpush.msra.mxu2 %v2416_v9 }
 0x127   :  { %v468_v13 = vpop.f32.mrf.mxu0 }
 0x128   :  { %v2421_v20 = vadd.f32 %v468_v13, %v2312_v1  ;;  %v2438_v1 = vadd.f32 %v459_v27, %v2371_v53  ;;  %v2456_v53 = vadd.f32 %v2365_v38, %v2381_v23  ;;  %v2462_v27 = vadd.f32 %v2341_v18, %v145_v43  ;;  %v110_v37 = vpop.permute.xlu1 %109 }
 0x129   :  { %v601_v23 = vmul.f32 0.044715, %v569_v34  ;;  %v2502_v34 = vadd.f32 %v2285_v47, %v120_v31  ;;  %v562_v31 = vmul.f32 %v530_v26, %v2478_v56 }
 0x12a   :  { %v538_v24 = vmul.f32 %v2421_v20, %v2421_v20  ;;  %v533_v51 = vmul.f32 %v2456_v53, %v2456_v53  ;;  %v532_v60 = vmul.f32 %v2462_v27, %v2462_v27 }
 0x12b   :  { %v633_v63 = vadd.f32 %v601_v23, %v2424_v22 }
 0x12c   :  { %v570_v32 = vmul.f32 %v538_v24, %v2421_v20  ;;  %v565_v11 = vmul.f32 %v533_v51, %v2456_v53  ;;  %v2495_v24 = vadd.f32 %v2293_v52, %v125_v5  ;;  %v563_v52 = vmul.f32 %v531_v10, %v2468_v48 }
 0x12d   :  { %v665_v36 = vmul.f32 0.7978846, %v633_v63  ;;  %v2519_v5 = vadd.f32 %v2270_v40, %v110_v37 }
 0x12e   :  { %v602_v42 = vmul.f32 0.044715, %v570_v32  ;;  %v632_v32 = vadd.f32 %v600_v6, %v2429_v25  ;;  %v528_v47 = vmul.f32 %v2495_v24, %v2495_v24  ;;  %v595_v6 = vmul.f32 0.044715, %v563_v52 }
 0x12f   :  { %v471_v28 = vpop.f32.mrf.mxu0 }
 0x130   :  { %v2441_v2 = vadd.f32 %v471_v28, %v2298_v54  ;;  %v535_v54 = vmul.f32 %v2438_v1, %v2438_v1  ;;  %v634_v61 = vadd.f32 %v602_v42, %v2421_v20  ;;  %v560_v63 = vmul.f32 %v528_v47, %v2495_v24 }
 0x132   :  { %v539_v33 = vmul.f32 %v2441_v2, %v2441_v2  ;;  %v567_v55 = vmul.f32 %v535_v54, %v2438_v1  ;;  %v666_v3 = vmul.f32 0.7978846, %v634_v61 }
 0x134   :  { %v571_v4 = vmul.f32 %v539_v33, %v2441_v2  ;;  %v599_v13 = vmul.f32 0.044715, %v567_v55  ;;  %v598_v33 = vmul.f32 0.044715, %v566_v50  ;;  %v527_v50 = vmul.f32 %v2502_v34, %v2502_v34 }
 0x136   :  { %v603_v41 = vmul.f32 0.044715, %v571_v4  ;;  %v631_v42 = vadd.f32 %v599_v13, %v2438_v1  ;;  %v525_v13 = vmul.f32 %v2519_v5, %v2519_v5  ;;  %v559_v26 = vmul.f32 %v527_v50, %v2502_v34 }
 0x137   :  { %v474_v38 = vpop.f32.mrf.mxu0 }
 0x138   :  { %v2474_v18 = vadd.f32 %v474_v38, %v2290_v49  ;;  %v635_v43 = vadd.f32 %v603_v41, %v2441_v2  ;;  %v2487_v49 = vadd.f32 %v2301_v57, %v130_v16  ;;  %v564_v57 = vmul.f32 %v532_v60, %v2462_v27  ;;  %v115_v16 = vpop.permute.xlu0 %114 }
 0x139   :  { %v597_v38 = vmul.f32 0.044715, %v565_v11  ;;  %v2512_v23 = vadd.f32 %v2279_v44, %v115_v16  ;;  %v630_v60 = vadd.f32 %v598_v33, %v2444_v30 }
 0x13a   :  { %v540_v21 = vmul.f32 %v2474_v18, %v2474_v18  ;;  %v667_v15 = vmul.f32 0.7978846, %v635_v43  ;;  %v529_v54 = vmul.f32 %v2487_v49, %v2487_v49  ;;  %v596_v51 = vmul.f32 0.044715, %v564_v57 }
 0x13b   :  { %v664_v43 = vmul.f32 0.7978846, %v632_v32  ;;  %v629_v61 = vadd.f32 %v597_v38, %v2456_v53  ;;  %v526_v10 = vmul.f32 %v2512_v23, %v2512_v23  ;;  %v662_v40 = vmul.f32 0.7978846, %v630_v60 }
 0x13c   :  { %v572_v14 = vmul.f32 %v540_v21, %v2474_v18  ;;  %1752 = vtanh.f32 %v667_v15  ;;  %v561_v44 = vmul.f32 %v529_v54, %v2487_v49  ;;  %v663_v21 = vmul.f32 0.7978846, %v631_v42 }
 0x13d   :  { %1754 = vtanh.f32 %v666_v3  ;;  %v594_v15 = vmul.f32 0.044715, %v562_v31  ;;  %v627_v3 = vadd.f32 %v595_v6, %v2468_v48  ;;  %v558_v54 = vmul.f32 %v526_v10, %v2512_v23 }
 0x13e   :  { %v604_v28 = vmul.f32 0.044715, %v572_v14  ;;  %1756 = vtanh.f32 %v665_v36  ;;  %v628_v14 = vadd.f32 %v596_v51, %v2462_v27  ;;  %v593_v32 = vmul.f32 0.044715, %v561_v44 }
 0x13f   :  { %v2507_v4 = vpop.f32.mrf.mxu0  ;;  %v592_v42 = vmul.f32 0.044715, %v560_v63  ;;  %v557_v38 = vmul.f32 %v525_v13, %v2519_v5  ;;  %v591_v60 = vmul.f32 0.044715, %v559_v26 }
 0x140   :  { %v636_v41 = vadd.f32 %v604_v28, %v2474_v18  ;;  %v661_v28 = vmul.f32 0.7978846, %v629_v61  ;;  %v660_v37 = vmul.f32 0.7978846, %v628_v14 }
 0x141   :  { %v624_v10 = vadd.f32 %v592_v42, %v2495_v24  ;;  %v623_v26 = vadd.f32 %v591_v60, %v2502_v34 }
 0x142   :  { %v668_v55 = vmul.f32 0.7978846, %v636_v41  ;;  %v1753_v11 = vpop.eup %1752  ;;  %v626_v41 = vadd.f32 %v594_v15, %v2478_v56 }
 0x143   :  { %v1755_v16 = vpop.eup %1754  ;;  %v731_v52 = vadd.f32 1.0, %v1753_v11  ;;  %v590_v11 = vmul.f32 0.044715, %v558_v54  ;;  %v656_v54 = vmul.f32 0.7978846, %v624_v10 }
 0x144   :  { %1758 = vtanh.f32 %v668_v55  ;;  %v1757_v33 = vpop.eup %1756  ;;  %v730_v31 = vadd.f32 1.0, %v1755_v16  ;;  %v659_v55 = vmul.f32 0.7978846, %v627_v3  ;;  %v658_v6 = vmul.f32 0.7978846, %v626_v41 }
 0x145   :  { %1760 = vtanh.f32 %v664_v43  ;;  %v625_v43 = vadd.f32 %v593_v32, %v2487_v49  ;;  %v763_v44 = vmul.f32 0.5, %v731_v52 }
 0x146   :  { %1762 = vtanh.f32 %v663_v21  ;;  %v729_v21 = vadd.f32 1.0, %v1757_v33  ;;  %v762_v14 = vmul.f32 0.5, %v730_v31 }
 0x147   :  { %v2532_v57 = vpop.f32.mrf.mxu0  ;;  %1764 = vtanh.f32 %v662_v40  ;;  %v657_v16 = vmul.f32 0.7978846, %v625_v43  ;;  %v795_v3 = vmul.f32 %v763_v44, %v2441_v2 }
 0x148   :  { %1766 = vtanh.f32 %v661_v28  ;;  %v589_v28 = vmul.f32 0.044715, %v557_v38  ;;  %v761_v32 = vmul.f32 0.5, %v729_v21  ;;  %v655_v38 = vmul.f32 0.7978846, %v623_v26 }
 0x149   :  { %1768 = vtanh.f32 %v660_v37 }
 0x14a   :  { %v1759_v36 = vpop.eup %1758  ;;  %1770 = vtanh.f32 %v659_v55  ;;  %v793_v2 = vmul.f32 %v761_v32, %v2424_v22 }
 0x14b   :  { %v732_v47 = vadd.f32 1.0, %v1759_v36  ;;  %v1761_v51 = vpop.eup %1760  ;;  %1772 = vtanh.f32 %v658_v6  ;;  %v622_v36 = vadd.f32 %v590_v11, %v2512_v23 }
 0x14c   :  { %v1763_v61 = vpop.eup %1762  ;;  %v728_v15 = vadd.f32 1.0, %v1761_v51  ;;  %1774 = vtanh.f32 %v657_v16 }
 0x14d   :  { %v764_v50 = vmul.f32 0.5, %v732_v47  ;;  %v1765_v13 = vpop.eup %1764  ;;  %v727_v33 = vadd.f32 1.0, %v1763_v61  ;;  %v621_v47 = vadd.f32 %v589_v28, %v2519_v5  ;;  %1776 = vtanh.f32 %v656_v54 }
 0x14e   :  { %v1767_v52 = vpop.eup %1766  ;;  %v760_v37 = vmul.f32 0.5, %v728_v15  ;;  %v726_v41 = vadd.f32 1.0, %v1765_v13  ;;  %v654_v43 = vmul.f32 0.7978846, %v622_v36  ;;  %1778 = vtanh.f32 %v655_v38 }
 0x14f   :  { %v2540_v63 = vpop.f32.mrf.mxu0  ;;  %v796_v40 = vmul.f32 %v764_v50, %v2474_v18  ;;  %v794_v18 = vmul.f32 %v762_v14, %v2421_v20  ;;  %v1769_v42 = vpop.eup %1768  ;;  %v759_v31 = vmul.f32 0.5, %v727_v33  ;;  %v725_v51 = vadd.f32 1.0, %v1767_v52 }
 0x150   :  { %v1771_v55 = vpop.eup %1770  ;;  %v792_v20 = vmul.f32 %v760_v37, %v2429_v25  ;;  %v758_v50 = vmul.f32 0.5, %v726_v41  ;;  %v724_v44 = vadd.f32 1.0, %v1769_v42  ;;  %v653_v61 = vmul.f32 0.7978846, %v621_v47 }
 0x151   :  { %1069 = vmatpush.msra.mxu1 %v796_v40  ;;  %1700 = vmatpush.msrb.mxu3 %v796_v40  ;;  %v1773_v21 = vpop.eup %1772  ;;  %v791_v22 = vmul.f32 %v759_v31, %v2438_v1  ;;  %v757_v6 = vmul.f32 0.5, %v725_v51  ;;  %v723_v10 = vadd.f32 1.0, %v1771_v55  ;;  %1780 = vtanh.f32 %v654_v43  ;;  %v813_v43 = vld [vmem:[%s3184_s3] sm:$0xff] }
 0x152   :  { %v1775_v11 = vpop.eup %1774  ;;  %v790_v40 = vmul.f32 %v758_v50, %v2444_v30  ;;  %v756_v14 = vmul.f32 0.5, %v724_v44  ;;  %v722_v15 = vadd.f32 1.0, %v1773_v21  ;;  %1782 = vtanh.f32 %v653_v61 }
 0x153   :  { %1070 = vmatpush.msra.mxu1 %v795_v3  ;;  %1701 = vmatpush.msrb.mxu3 %v795_v3  ;;  %v1777_v25 = vpop.eup %1776  ;;  %v789_v13 = vmul.f32 %v757_v6, %v2456_v53  ;;  %v755_v16 = vmul.f32 0.5, %v723_v10  ;;  %v721_v26 = vadd.f32 1.0, %v1775_v11 }
 0x154   :  { %v1779_v28 = vpop.eup %1778  ;;  %v788_v3 = vmul.f32 %v756_v14, %v2462_v27  ;;  %v754_v32 = vmul.f32 0.5, %v722_v15  ;;  %v720_v33 = vadd.f32 1.0, %v1777_v25 }
 0x155   :  { %1071 = vmatpush.msra.mxu1 %v794_v18  ;;  %1702 = vmatpush.msrb.mxu3 %v794_v18  ;;  %v787_v30 = vmul.f32 %v755_v16, %v2468_v48  ;;  %v753_v54 = vmul.f32 0.5, %v721_v26  ;;  %v719_v36 = vadd.f32 1.0, %v1779_v28 }
 0x156   :  { %v786_v53 = vmul.f32 %v754_v32, %v2478_v56  ;;  %v752_v37 = vmul.f32 0.5, %v720_v33  ;;  %v873_v32 = vld [vmem:[%s3184_s3 + $0x1e0] sm:$0xff] }
 0x157   :  { %v2549_v60 = vpop.f32.mrf.mxu0  ;;  %1072 = vmatpush.msra.mxu1 %v793_v2  ;;  %1703 = vmatpush.msrb.mxu3 %v793_v2  ;;  %v1781_v52 = vpop.eup %1780  ;;  %v785_v27 = vmul.f32 %v753_v54, %v2487_v49  ;;  %v751_v42 = vmul.f32 0.5, %v719_v36 }
 0x158   :  { %v1783_v18 = vpop.eup %1782  ;;  %v718_v41 = vadd.f32 1.0, %v1781_v52  ;;  %v784_v48 = vmul.f32 %v752_v37, %v2495_v24 }
 0x159   :  { %1073 = vmatpush.msra.mxu1 %v792_v20  ;;  %1704 = vmatpush.msrb.mxu3 %v792_v20  ;;  %v717_v38 = vadd.f32 1.0, %v1783_v18  ;;  %v783_v31 = vmul.f32 %v751_v42, %v2502_v34 }
 0x15a   :  { %v750_v2 = vmul.f32 0.5, %v718_v41 }
 0x15b   :  { %1074 = vmatpush.msra.mxu1 %v791_v22  ;;  %1705 = vmatpush.msrb.mxu3 %v791_v22  ;;  %v749_v51 = vmul.f32 0.5, %v717_v38  ;;  %v875_v38 = vld [vmem:[%s3184_s3 + $0x1f0] sm:$0xff] }
 0x15c   :  { %v782_v49 = vmul.f32 %v750_v2, %v2512_v23 }
 0x15d   :  { %1075 = vmatpush.msra.mxu1 %v790_v40  ;;  %1706 = vmatpush.msrb.mxu3 %v790_v40  ;;  %v781_v24 = vmul.f32 %v749_v51, %v2519_v5  ;;  %v2585_v5 = vadd.f32 %v2540_v63, %v2426_v17 }
 0x15f   :  { %v489_v1 = vpop.f32.mrf.mxu0  ;;  %1076 = vmatpush.msra.mxu1 %v789_v13  ;;  %1707 = vmatpush.msrb.mxu3 %v789_v13 }
 0x160   :  { %v2565_v55 = vadd.f32 %v489_v1, %v2408_v12  ;;  %v2577_v12 = vadd.f32 %v2549_v60, %v2435_v29  ;;  %v190_v29 = vpop.permute.xlu2 %189  ;;  %v2593_v60 = vadd.f32 %v2532_v57, %v2452_v35  ;;  %v815_v57 = vld [vmem:[%s3184_s3 + $0x10] sm:$0xff] }
 0x161   :  { %1077 = vmatpush.msra.mxu1 %v788_v3  ;;  %1708 = vmatpush.msrb.mxu3 %v788_v3 }
 0x162   :  { %v545_v23 = vmul.f32 %v2565_v55, %v2565_v55  ;;  %v544_v44 = vmul.f32 %v2577_v12, %v2577_v12  ;;  %v542_v61 = vmul.f32 %v2593_v60, %v2593_v60 }
 0x163   :  { %1078 = vmatpush.msra.mxu1 %v787_v30  ;;  %1709 = vmatpush.msrb.mxu3 %v787_v30 }
 0x164   :  { %v577_v63 = vmul.f32 %v545_v23, %v2565_v55  ;;  %v574_v25 = vmul.f32 %v542_v61, %v2593_v60  ;;  %v821_v23 = vld [vmem:[%s3184_s3 + $0x40] sm:$0xff] }
 0x165   :  { %1079 = vmatpush.msra.mxu1 %v786_v53  ;;  %1710 = vmatpush.msrb.mxu3 %v786_v53 }
 0x166   :  { %v609_v11 = vmul.f32 0.044715, %v577_v63  ;;  %v606_v30 = vmul.f32 0.044715, %v574_v25 }
 0x167   :  { %v492_v47 = vpop.f32.mrf.mxu0  ;;  %1080 = vmatpush.msra.mxu1 %v785_v27  ;;  %1711 = vmatpush.msrb.mxu3 %v785_v27 }
 0x168   :  { %v2562_v56 = vadd.f32 %v492_v47, %v2388_v58  ;;  %v869_v58 = vld [vmem:[%s3184_s3 + $0x1c0] sm:$0xff]  ;;  %v638_v41 = vadd.f32 %v606_v30, %v2593_v60 }
 0x169   :  { %1081 = vmatpush.msra.mxu1 %v784_v48  ;;  %1712 = vmatpush.msrb.mxu3 %v784_v48  ;;  %v837_v30 = vld [vmem:[%s3184_s3 + $0xc0] sm:$0xff] }
 0x16a   :  { %v546_v34 = vmul.f32 %v2562_v56, %v2562_v56  ;;  %v670_v48 = vmul.f32 0.7978846, %v638_v41  ;;  %v832_v41 = vld [vmem:[%s3184_s3 + $0x98] sm:$0xff] }
 0x16b   :  { %1082 = vmatpush.msra.mxu1 %v783_v31  ;;  %1713 = vmatpush.msrb.mxu3 %v783_v31 }
 0x16c   :  { %v578_v21 = vmul.f32 %v546_v34, %v2562_v56 }
 0x16d   :  { %1083 = vmatpush.msra.mxu1 %v782_v49  ;;  %1714 = vmatpush.msrb.mxu3 %v782_v49 }
 0x16e   :  { %v610_v6 = vmul.f32 0.044715, %v578_v21 }
 0x16f   :  { %v495_v20 = vpop.f32.mrf.mxu0  ;;  %1084 = vmatpush.msra.mxu1 %v781_v24  ;;  %1715 = vmatpush.msrb.mxu3 %v781_v24 }
 0x170   :  { %v2588_v50 = vadd.f32 %v495_v20, %v2398_v62  ;;  %1085 = vmatmul.f32.vlgmr.msra.gmra.mxu1 %v813_v43  ;;  %1169 = vmatmul.f32.vlgmr.msrb.gmra.mxu3 %v869_v58  ;;  %v2601_v62 = vadd.f32 %v2507_v4, %v190_v29  ;;  %v871_v4 = vld [vmem:[%s3184_s3 + $0x1d0] sm:$0xff]  ;;  %v642_v16 = vadd.f32 %v610_v6, %v2562_v56 }
 0x171   :  { %1716 = vmatpush.msra.mxu3 %v2383_v45  ;;  %v543_v45 = vmul.f32 %v2585_v5, %v2585_v5 }
 0x172   :  { %v547_v17 = vmul.f32 %v2588_v50, %v2588_v50  ;;  %v541_v10 = vmul.f32 %v2601_v62, %v2601_v62  ;;  %v674_v52 = vmul.f32 0.7978846, %v642_v16  ;;  %v825_v16 = vld [vmem:[%s3184_s3 + $0x60] sm:$0xff] }
 0x173   :  { %1717 = vmatpush.msra.mxu3 %v2386_v46  ;;  %v576_v46 = vmul.f32 %v544_v44, %v2577_v12  ;;  %v575_v40 = vmul.f32 %v543_v45, %v2585_v5 }
 0x174   :  { %v579_v35 = vmul.f32 %v547_v17, %v2588_v50  ;;  %v573_v28 = vmul.f32 %v541_v10, %v2601_v62 }
 0x175   :  { %1718 = vmatpush.msra.mxu3 %v2392_v59  ;;  %v608_v26 = vmul.f32 0.044715, %v576_v46  ;;  %v607_v3 = vmul.f32 0.044715, %v575_v40 }
 0x176   :  { %v611_v22 = vmul.f32 0.044715, %v579_v35  ;;  %v605_v18 = vmul.f32 0.044715, %v573_v28  ;;  %v818_v28 = vld [vmem:[%s3184_s3 + $0x28] sm:$0xff] }
 0x177   :  { %1719 = vmatpush.msra.mxu3 %v2396_v39  ;;  %v498_v59 = vpop.f32.mrf.mxu0  ;;  %v641_v39 = vadd.f32 %v609_v11, %v2565_v55  ;;  %v823_v11 = vld [vmem:[%s3184_s3 + $0x50] sm:$0xff] }
 0x178   :  { %v499_v14 = vadd.f32 %v498_v59, %v2379_v19  ;;  %1088 = vmatmul.f32.gmra.mxu1 %v815_v57  ;;  %1172 = vmatmul.f32.gmra.mxu3 %v871_v4  ;;  %v643_v15 = vadd.f32 %v611_v22, %v2588_v50  ;;  %v637_v42 = vadd.f32 %v605_v18, %v2601_v62  ;;  %v841_v18 = vld [vmem:[%s3184_s3 + $0xe0] sm:$0xff] }
 0x179   :  { %1720 = vmatpush.msra.mxu3 %v2402_v0  ;;  %v817_v0 = vld [vmem:[%s3184_s3 + $0x20] sm:$0xff]  ;;  %v673_v54 = vmul.f32 0.7978846, %v641_v39 }
 0x17a   :  { %v548_v13 = vmul.f32 %v499_v14, %v499_v14  ;;  %v675_v19 = vmul.f32 0.7978846, %v643_v15  ;;  %v669_v31 = vmul.f32 0.7978846, %v637_v42  ;;  %v829_v39 = vld [vmem:[%s3184_s3 + $0x80] sm:$0xff] }
 0x17b   :  { %1721 = vmatpush.msra.mxu3 %v2406_v7  ;;  %v640_v7 = vadd.f32 %v608_v26, %v2577_v12  ;;  %v872_v26 = vld [vmem:[%s3184_s3 + $0x1d8] sm:$0xff]  ;;  %v845_v42 = vld [vmem:[%s3184_s3 + $0x100] sm:$0xff] }
 0x17c   :  { %v580_v1 = vmul.f32 %v548_v13, %v499_v14  ;;  %1784 = vtanh.f32 %v675_v19  ;;  %v831_v19 = vld [vmem:[%s3184_s3 + $0x90] sm:$0xff] }
 0x17d   :  { %1722 = vmatpush.msra.mxu3 %v2412_v8  ;;  %v639_v8 = vadd.f32 %v607_v3, %v2585_v5  ;;  %1786 = vtanh.f32 %v674_v52  ;;  %v672_v37 = vmul.f32 0.7978846, %v640_v7  ;;  %v820_v3 = vld [vmem:[%s3184_s3 + $0x38] sm:$0xff]  ;;  %v835_v52 = vld [vmem:[%s3184_s3 + $0xb0] sm:$0xff] }
 0x17e   :  { %v612_v33 = vmul.f32 0.044715, %v580_v1  ;;  %1788 = vtanh.f32 %v673_v54  ;;  %v874_v1 = vld [vmem:[%s3184_s3 + $0x1e8] sm:$0xff]  ;;  %v824_v7 = vld [vmem:[%s3184_s3 + $0x58] sm:$0xff] }
 0x17f   :  { %1723 = vmatpush.msra.mxu3 %v2416_v9  ;;  %v671_v27 = vmul.f32 0.7978846, %v639_v8  ;;  %v819_v9 = vld [vmem:[%s3184_s3 + $0x30] sm:$0xff]  ;;  %v826_v54 = vld [vmem:[%s3184_s3 + $0x68] sm:$0xff]  ;;  %v828_v8 = vld [vmem:[%s3184_s3 + $0x78] sm:$0xff] }
 0x180   :  { %1091 = vmatmul.f32.gmra.mxu1 %v817_v0  ;;  %1175 = vmatmul.f32.gmra.mxu3 %v873_v32  ;;  %v644_v36 = vadd.f32 %v612_v33, %v499_v14  ;;  %v876_v0 = vld [vmem:[%s3184_s3 + $0x1f8] sm:$0xff]  ;;  %v833_v32 = vld [vmem:[%s3184_s3 + $0xa0] sm:$0xff]  ;;  %v822_v33 = vld [vmem:[%s3184_s3 + $0x48] sm:$0xff] }
 0x182   :  { %v676_v53 = vmul.f32 0.7978846, %v644_v36  ;;  %v1785_v47 = vpop.eup %1784  ;;  %v839_v36 = vld [vmem:[%s3184_s3 + $0xd0] sm:$0xff] }
 0x183   :  { %v1787_v2 = vpop.eup %1786  ;;  %v739_v49 = vadd.f32 1.0, %v1785_v47  ;;  %v847_v47 = vld [vmem:[%s3184_s3 + $0x110] sm:$0xff] }
 0x184   :  { %1790 = vtanh.f32 %v676_v53  ;;  %v1789_v51 = vpop.eup %1788  ;;  %v738_v58 = vadd.f32 1.0, %v1787_v2  ;;  %v830_v53 = vld [vmem:[%s3184_s3 + $0x88] sm:$0xff] }
 0x185   :  { %1792 = vtanh.f32 %v672_v37  ;;  %v771_v29 = vmul.f32 0.5, %v739_v49  ;;  %v737_v44 = vadd.f32 1.0, %v1789_v51  ;;  %v843_v37 = vld [vmem:[%s3184_s3 + $0xf0] sm:$0xff]  ;;  %v838_v51 = vld [vmem:[%s3184_s3 + $0xc8] sm:$0xff]  ;;  %v2757_v49 = vpop.permute.xlu2 %986 }
 0x186   :  { %1794 = vtanh.f32 %v671_v27  ;;  %v770_v63 = vmul.f32 0.5, %v738_v58 }
 0x187   :  { %1796 = vtanh.f32 %v670_v48  ;;  %v803_v57 = vmul.f32 %v771_v29, %v2588_v50  ;;  %v769_v4 = vmul.f32 0.5, %v737_v44  ;;  %v836_v48 = vld [vmem:[%s3184_s3 + $0xb8] sm:$0xff]  ;;  %v855_v44 = vld [vmem:[%s3184_s3 + $0x150] sm:$0xff] }
 0x188   :  { %1094 = vmatmul.f32.gmra.mxu1 %v819_v9  ;;  %1178 = vmatmul.f32.gmra.mxu3 %v875_v38  ;;  %1798 = vtanh.f32 %v669_v31  ;;  %v802_v22 = vmul.f32 %v770_v63, %v2562_v56  ;;  %v834_v9 = vld [vmem:[%s3184_s3 + $0xa8] sm:$0xff]  ;;  %v849_v31 = vld [vmem:[%s3184_s3 + $0x120] sm:$0xff] }
 0x189   :  { %v801_v59 = vmul.f32 %v769_v4, %v2565_v55 }
 0x18a   :  { %v1791_v24 = vpop.eup %1790 }
 0x18b   :  { %v740_v43 = vadd.f32 1.0, %v1791_v24  ;;  %v1793_v34 = vpop.eup %1792  ;;  %v851_v24 = vld [vmem:[%s3184_s3 + $0x130] sm:$0xff] }
 0x18c   :  { %v1795_v21 = vpop.eup %1794  ;;  %v736_v45 = vadd.f32 1.0, %v1793_v34  ;;  %v853_v34 = vld [vmem:[%s3184_s3 + $0x140] sm:$0xff] }
 0x18d   :  { %v772_v20 = vmul.f32 0.5, %v740_v43  ;;  %v1797_v35 = vpop.eup %1796  ;;  %v735_v61 = vadd.f32 1.0, %v1795_v21  ;;  %v840_v43 = vld [vmem:[%s3184_s3 + $0xd8] sm:$0xff] }
 0x18e   :  { %v1799_v46 = vpop.eup %1798  ;;  %v768_v6 = vmul.f32 0.5, %v736_v45  ;;  %v734_v10 = vadd.f32 1.0, %v1797_v35  ;;  %v844_v21 = vld [vmem:[%s3184_s3 + $0xf8] sm:$0xff]  ;;  %v857_v35 = vld [vmem:[%s3184_s3 + $0x160] sm:$0xff] }
 0x18f   :  { %v804_v17 = vmul.f32 %v772_v20, %v499_v14  ;;  %v767_v40 = vmul.f32 0.5, %v735_v61  ;;  %v733_v14 = vadd.f32 1.0, %v1799_v46  ;;  %v2773_v20 = vpop.permute.xlu2 %971 }
 0x190   :  { %1097 = vmatmul.f32.gmra.mxu1 %v821_v23  ;;  %v800_v50 = vmul.f32 %v768_v6, %v2577_v12  ;;  %v766_v15 = vmul.f32 0.5, %v734_v10  ;;  %v814_v12 = vld [vmem:[%s3184_s3 + $0x8] sm:$0xff]  ;;  %v859_v6 = vld [vmem:[%s3184_s3 + $0x170] sm:$0xff]  ;;  %v848_v10 = vld [vmem:[%s3184_s3 + $0x118] sm:$0xff] }
 0x191   :  { %1190 = vmatpush.msra.mxu2 %v804_v17  ;;  %1724 = vmatpush.msra.mxu3 %v804_v17  ;;  %v799_v56 = vmul.f32 %v767_v40, %v2585_v5  ;;  %v765_v25 = vmul.f32 0.5, %v733_v14  ;;  %v870_v5 = vld [vmem:[%s3184_s3 + $0x1c8] sm:$0xff]  ;;  %v2781_v17 = vpop.permute.xlu0 %981 }
 0x192   :  { %v798_v55 = vmul.f32 %v766_v15, %v2593_v60  ;;  %v827_v60 = vld [vmem:[%s3184_s3 + $0x70] sm:$0xff]  ;;  %v842_v23 = vld [vmem:[%s3184_s3 + $0xe8] sm:$0xff] }
 0x193   :  { %1191 = vmatpush.msra.mxu2 %v803_v57  ;;  %1725 = vmatpush.msra.mxu3 %v803_v57  ;;  %v797_v13 = vmul.f32 %v765_v25, %v2601_v62  ;;  %v816_v62 = vld [vmem:[%s3184_s3 + $0x18] sm:$0xff]  ;;  %v846_v57 = vld [vmem:[%s3184_s3 + $0x108] sm:$0xff] }
 0x194   :  { %v850_v15 = vld [vmem:[%s3184_s3 + $0x128] sm:$0xff] }
 0x195   :  { %1192 = vmatpush.msra.mxu2 %v802_v22  ;;  %1726 = vmatpush.msra.mxu3 %v802_v22 }
 0x197   :  { %1193 = vmatpush.msra.mxu2 %v801_v59  ;;  %1727 = vmatpush.msra.mxu3 %v801_v59  ;;  %v2783_v63 = vpop.permute.xlu2 %961  ;;  %v2803_v59 = vpop.permute.xlu1 %976 }
 0x198   :  { %1100 = vmatmul.f32.gmra.mxu1 %v823_v11 }
 0x199   :  { %1194 = vmatpush.msra.mxu2 %v800_v50  ;;  %1728 = vmatpush.msra.mxu3 %v800_v50  ;;  %v2791_v4 = vpop.permute.xlu0 %966  ;;  %v861_v50 = vld [vmem:[%s3184_s3 + $0x180] sm:$0xff] }
 0x19b   :  { %1195 = vmatpush.msra.mxu2 %v799_v56  ;;  %1729 = vmatpush.msra.mxu3 %v799_v56 }
 0x19d   :  { %1196 = vmatpush.msra.mxu2 %v798_v55  ;;  %1730 = vmatpush.msra.mxu3 %v798_v55 }
 0x19f   :  { %1197 = vmatpush.msra.mxu2 %v797_v13  ;;  %1731 = vmatpush.msra.mxu3 %v797_v13  ;;  %v2793_v61 = vpop.permute.xlu2 %1056  ;;  %v2815_v25 = vpop.permute.xlu1 %1066 }
 0x1a0   :  { %1103 = vmatmul.f32.gmra.mxu1 %v825_v16  ;;  %1198 = vmatmul.f32.vlgmr.msra.gmra.mxu2 %v814_v12  ;;  %v863_v16 = vld [vmem:[%s3184_s3 + $0x190] sm:$0xff]  ;;  %v852_v12 = vld [vmem:[%s3184_s3 + $0x138] sm:$0xff] }
 0x1a1   :  { %1282 = vmatmul.f32.vlgmr.msra.gmra.mxu3 %v870_v5  ;;  %v2805_v11 = vpop.permute.xlu0 %1061 }
 0x1a7   :  { %v947_v14 = vpop.permute.xlu2 %946 }
 0x1a8   :  { %1106 = vmatmul.f32.gmra.mxu1 %v827_v60  ;;  %1201 = vmatmul.f32.gmra.mxu2 %v816_v62 }
 0x1a9   :  { %1285 = vmatmul.f32.gmra.mxu3 %v872_v26  ;;  %v952_v13 = vpop.permute.xlu0 %951  ;;  %v2829_v26 = vpop.permute.xlu1 %956 }
 0x1af   :  { %v2825_v5 = vpop.permute.xlu2 %1041 }
 0x1b0   :  { %1109 = vmatmul.f32.gmra.mxu1 %v829_v39  ;;  %1204 = vmatmul.f32.gmra.mxu2 %v818_v28  ;;  %v865_v39 = vld [vmem:[%s3184_s3 + $0x1a0] sm:$0xff]  ;;  %v854_v28 = vld [vmem:[%s3184_s3 + $0x148] sm:$0xff] }
 0x1b1   :  { %1288 = vmatmul.f32.gmra.mxu3 %v874_v1  ;;  %v2837_v1 = vpop.permute.xlu0 %1046 }
 0x1b2   :  { %3190 = vst [vmem:[#allocation3_spill] sm:$0xff] %v2837_v1 }
 0x1b8   :  { %1112 = vmatmul.f32.gmra.mxu1 %v831_v19  ;;  %1207 = vmatmul.f32.gmra.mxu2 %v820_v3  ;;  %v932_v19 = vpop.permute.xlu2 %931 }
 0x1b9   :  { %1291 = vmatmul.f32.gmra.mxu3 %v876_v0 }
 0x1c0   :  { %1115 = vmatmul.f32.gmra.mxu1 %v833_v32  ;;  %1210 = vmatmul.f32.gmra.mxu2 %v822_v33 }
 0x1c8   :  { %1118 = vmatmul.f32.gmra.mxu1 %v835_v52  ;;  %1213 = vmatmul.f32.gmra.mxu2 %v824_v7  ;;  %v867_v52 = vld [vmem:[%s3184_s3 + $0x1b0] sm:$0xff]  ;;  %v856_v7 = vld [vmem:[%s3184_s3 + $0x158] sm:$0xff] }
 0x1d0   :  { %1121 = vmatmul.f32.gmra.mxu1 %v837_v30  ;;  %1216 = vmatmul.f32.gmra.mxu2 %v826_v54  ;;  %v2849_v30 = vpop.permute.xlu1 %1051  ;;  %v937_v54 = vpop.permute.xlu0 %936 }
 0x1d8   :  { %1124 = vmatmul.f32.gmra.mxu1 %v839_v36  ;;  %1219 = vmatmul.f32.gmra.mxu2 %v828_v8 }
 0x1e0   :  { %1127 = vmatmul.f32.gmra.mxu1 %v841_v18  ;;  %1222 = vmatmul.f32.gmra.mxu2 %v830_v53 }
 0x1e8   :  { %1130 = vmatmul.f32.gmra.mxu1 %v843_v37  ;;  %1225 = vmatmul.f32.gmra.mxu2 %v832_v41  ;;  %v858_v37 = vld [vmem:[%s3184_s3 + $0x168] sm:$0xff]  ;;  %v942_v41 = vpop.permute.xlu1 %941 }
 0x1ed   :  { %v2733_v27 = vpop.f32.mrf.mxu1 }
 0x1f0   :  { %1133 = vmatmul.f32.gmra.mxu1 %v845_v42  ;;  %1228 = vmatmul.f32.gmra.mxu2 %v834_v9 }
 0x1f5   :  { %v2741_v38 = vpop.f32.mrf.mxu1 }
 0x1f8   :  { %1136 = vmatmul.f32.gmra.mxu1 %v847_v47  ;;  %1231 = vmatmul.f32.gmra.mxu2 %v836_v48  ;;  %v860_v48 = vld [vmem:[%s3184_s3 + $0x178] sm:$0xff] }
 0x1fd   :  { %v2749_v2 = vpop.f32.mrf.mxu1 }
 0x200   :  { %1139 = vmatmul.f32.gmra.mxu1 %v849_v31  ;;  %1234 = vmatmul.f32.gmra.mxu2 %v838_v51 }
 0x205   :  { %v2765_v58 = vpop.f32.mrf.mxu1 }
 0x208   :  { %1142 = vmatmul.f32.gmra.mxu1 %v851_v24  ;;  %1237 = vmatmul.f32.gmra.mxu2 %v840_v43 }
 0x20d   :  { %v1098_v29 = vpop.f32.mrf.mxu1 }
 0x20e   :  { %v1099_v3 = vadd.f32 %v1098_v29, %v932_v19  ;;  %v1170_v29 = vpop.f32.mrf.mxu3 }
 0x210   :  { %1145 = vmatmul.f32.gmra.mxu1 %v853_v34  ;;  %1240 = vmatmul.f32.gmra.mxu2 %v842_v23  ;;  %v862_v34 = vld [vmem:[%s3184_s3 + $0x188] sm:$0xff] }
 0x215   :  { %v1101_v45 = vpop.f32.mrf.mxu1 }
 0x216   :  { %v1102_v36 = vadd.f32 %v1101_v45, %v937_v54  ;;  %v2885_v54 = vpop.permute.xlu2 %1026 }
 0x218   :  { %1148 = vmatmul.f32.gmra.mxu1 %v855_v44  ;;  %1243 = vmatmul.f32.gmra.mxu2 %v844_v21 }
 0x21d   :  { %v1104_v22 = vpop.f32.mrf.mxu1 }
 0x21e   :  { %v1105_v42 = vadd.f32 %v1104_v22, %v942_v41 }
 0x220   :  { %1151 = vmatmul.f32.gmra.mxu1 %v857_v35  ;;  %1246 = vmatmul.f32.gmra.mxu2 %v846_v57  ;;  %v864_v35 = vld [vmem:[%s3184_s3 + $0x198] sm:$0xff] }
 0x223   :  { %v2795_v46 = vpop.f32.mrf.mxu2 }
 0x225   :  { %v1107_v56 = vpop.f32.mrf.mxu1 }
 0x226   :  { %v1108_v51 = vadd.f32 %v1107_v56, %v947_v14  ;;  %v2874_v14 = vpop.permute.xlu1 %1036  ;;  %v868_v56 = vld [vmem:[%s3184_s3 + $0x1b8] sm:$0xff] }
 0x228   :  { %1154 = vmatmul.f32.gmra.mxu1 %v859_v6  ;;  %1249 = vmatmul.f32.gmra.mxu2 %v848_v10  ;;  %v1173_v6 = vpop.f32.mrf.mxu3  ;;  %v866_v10 = vld [vmem:[%s3184_s3 + $0x1a8] sm:$0xff] }
 0x22b   :  { %v2807_v40 = vpop.f32.mrf.mxu2 }
 0x22d   :  { %v1110_v60 = vpop.f32.mrf.mxu1 }
 0x22e   :  { %v1111_v44 = vadd.f32 %v1110_v60, %v952_v13  ;;  %v927_v60 = vpop.permute.xlu1 %926 }
 0x230   :  { %1157 = vmatmul.f32.gmra.mxu1 %v861_v50  ;;  %1252 = vmatmul.f32.gmra.mxu2 %v850_v15  ;;  %v1176_v13 = vpop.f32.mrf.mxu3 }
 0x233   :  { %v2817_v55 = vpop.f32.mrf.mxu2 }
 0x235   :  { %v2839_v0 = vpop.f32.mrf.mxu1 }
 0x238   :  { %1160 = vmatmul.f32.gmra.mxu1 %v863_v16  ;;  %1255 = vmatmul.f32.gmra.mxu2 %v852_v12  ;;  %v2879_v16 = vpop.permute.xlu0 %1031 }
 0x23b   :  { %v2827_v62 = vpop.f32.mrf.mxu2 }
 0x23d   :  { %v1116_v18 = vpop.f32.mrf.mxu1 }
 0x240   :  { %1163 = vmatmul.f32.gmra.mxu1 %v865_v39  ;;  %1258 = vmatmul.f32.gmra.mxu2 %v854_v28  ;;  %v1179_v28 = vpop.f32.mrf.mxu3  ;;  %v922_v19 = vpop.permute.xlu0 %921 }
 0x243   :  { %v1211_v32 = vpop.f32.mrf.mxu2 }
 0x244   :  { %v2841_v33 = vadd.f32 %v1211_v32, %v1099_v3  ;;  %v2881_v32 = vpop.permute.xlu1 %1021 }
 0x245   :  { %v1119_v31 = vpop.f32.mrf.mxu1 }
 0x248   :  { %1166 = vmatmul.f32.gmra.mxu1 %v867_v52  ;;  %1261 = vmatmul.f32.gmra.mxu2 %v856_v7  ;;  %v1283_v52 = vpop.f32.mrf.mxu3 }
 0x24b   :  { %v1214_v8 = vpop.f32.mrf.mxu2 }
 0x24c   :  { %v2851_v53 = vadd.f32 %v1214_v8, %v1102_v36  ;;  %v2887_v8 = vpop.permute.xlu0 %1016 }
 0x24d   :  { %v1122_v23 = vpop.f32.mrf.mxu1 }
 0x24e   :  { %v1123_v41 = vadd.f32 %v1122_v23, %v2773_v20 }
 0x250   :  { %1264 = vmatmul.f32.gmra.mxu2 %v858_v37 }
 0x253   :  { %v1217_v9 = vpop.f32.mrf.mxu2 }
 0x254   :  { %v2856_v47 = vadd.f32 %v1217_v9, %v1105_v42 }
 0x255   :  { %v1125_v57 = vpop.f32.mrf.mxu1 }
 0x256   :  { %v1126_v37 = vadd.f32 %v1125_v57, %v2803_v59 }
 0x258   :  { %1267 = vmatmul.f32.gmra.mxu2 %v860_v48  ;;  %v1120_v48 = vadd.f32 %v1119_v31, %v2791_v4  ;;  %v1114_v31 = vadd.f32 %v2839_v0, %v2829_v26  ;;  %v1171_v0 = vadd.f32 %v1170_v29, %v2849_v30 }
 0x25b   :  { %v1220_v24 = vpop.f32.mrf.mxu2 }
 0x25c   :  { %v2861_v43 = vadd.f32 %v1220_v24, %v1108_v51  ;;  %v912_v51 = vpop.permute.xlu1 %911  ;;  %v2896_v24 = vpop.f32.mrf.mxu3 }
 0x25d   :  { %v1128_v15 = vpop.f32.mrf.mxu1  ;;  %v1087_v59 = vadd.f32 %v2733_v27, %v912_v51  ;;  %v1093_v51 = vadd.f32 %v2749_v2, %v922_v19  ;;  %v1180_v2 = vadd.f32 %v1179_v28, %v2815_v25  ;;  %v1301_v28 = vmul.f32 %v2856_v47, %v2856_v47 }
 0x260   :  { %1270 = vmatmul.f32.gmra.mxu2 %v862_v34  ;;  %v1117_v34 = vadd.f32 %v1116_v18, %v2783_v63  ;;  %v2916_v18 = vadd.f32 %v2795_v46, %v1087_v59 }
 0x263   :  { %v1223_v21 = vpop.f32.mrf.mxu2 }
 0x264   :  { %v2866_v45 = vadd.f32 %v1223_v21, %v1111_v44  ;;  %v1129_v44 = vadd.f32 %v1128_v15, %v2781_v17  ;;  %v917_v17 = vpop.permute.xlu2 %916 }
 0x265   :  { %v1131_v39 = vpop.f32.mrf.mxu1 }
 0x268   :  { %1273 = vmatmul.f32.gmra.mxu2 %v864_v35 }
 0x26b   :  { %v1226_v22 = vpop.f32.mrf.mxu2 }
 0x26c   :  { %v2920_v15 = vadd.f32 %v1226_v22, %v1114_v31 }
 0x26d   :  { %v2883_v7 = vpop.f32.mrf.mxu1 }
 0x26e   :  { %v1304_v30 = vmul.f32 %v2920_v15, %v2920_v15 }
 0x270   :  { %1276 = vmatmul.f32.gmra.mxu2 %v866_v10  ;;  %v2918_v10 = vpop.permute.xlu0 %1006 }
 0x273   :  { %v1229_v50 = vpop.f32.mrf.mxu2 }
 0x274   :  { %v2911_v57 = vadd.f32 %v1229_v50, %v1117_v34  ;;  %v2944_v34 = vadd.f32 %v1176_v13, %v2805_v11 }
 0x275   :  { %v2900_v21 = vpop.f32.mrf.mxu1 }
 0x276   :  { %v1305_v46 = vmul.f32 %v2911_v57, %v2911_v57 }
 0x278   :  { %1279 = vmatmul.f32.gmra.mxu2 %v868_v56 }
 0x27b   :  { %v1232_v12 = vpop.f32.mrf.mxu2 }
 0x27c   :  { %v2902_v35 = vadd.f32 %v1232_v12, %v1120_v48  ;;  %v1090_v12 = vadd.f32 %v2741_v38, %v917_v17  ;;  %v2971_v17 = vpop.permute.xlu2 %1011 }
 0x27e   :  { %v1306_v27 = vmul.f32 %v2902_v35, %v2902_v35  ;;  %v2974_v25 = vadd.f32 %v2807_v40, %v1090_v12  ;;  %v1300_v40 = vmul.f32 %v2851_v53, %v2851_v53 }
 0x280   :  { %v1338_v29 = vmul.f32 %v1306_v27, %v2902_v35 }
 0x282   :  { %v1370_v19 = vmul.f32 0.044715, %v1338_v29 }
 0x283   :  { %v1235_v3 = vpop.f32.mrf.mxu2 }
 0x284   :  { %v2893_v9 = vadd.f32 %v1235_v3, %v1123_v41  ;;  %v1174_v3 = vadd.f32 %v1173_v6, %v2793_v61  ;;  %v1132_v41 = vadd.f32 %v1131_v39, %v2757_v49  ;;  %v1303_v61 = vmul.f32 %v2866_v45, %v2866_v45  ;;  %v2949_v49 = vpop.f32.mrf.mxu3 }
 0x285   :  { %v1337_v39 = vmul.f32 %v1305_v46, %v2911_v57  ;;  %v1402_v29 = vadd.f32 %v1370_v19, %v2902_v35 }
 0x286   :  { %v1307_v23 = vmul.f32 %v2893_v9, %v2893_v9  ;;  %v1335_v27 = vmul.f32 %v1303_v61, %v2866_v45 }
 0x288   :  { %v1339_v50 = vmul.f32 %v1307_v23, %v2893_v9  ;;  %v1367_v61 = vmul.f32 0.044715, %v1335_v27  ;;  %v1434_v27 = vmul.f32 0.7978846, %v1402_v29 }
 0x28a   :  { %v1371_v6 = vmul.f32 0.044715, %v1339_v50  ;;  %v1369_v50 = vmul.f32 0.044715, %v1337_v39 }
 0x28b   :  { %v1238_v36 = vpop.f32.mrf.mxu2 }
 0x28c   :  { %v2891_v42 = vadd.f32 %v1238_v36, %v1126_v37  ;;  %v1295_v36 = vmul.f32 %v2916_v18, %v2916_v18  ;;  %v2936_v37 = vadd.f32 %v1283_v52, %v1171_v0  ;;  %v2981_v0 = vadd.f32 %v2817_v55, %v1093_v51  ;;  %v1292_v19 = vpop.f32.mrf.mxu3 }
 0x28d   :  { %v1333_v51 = vmul.f32 %v1301_v28, %v2856_v47 }
 0x28e   :  { %v1308_v20 = vmul.f32 %v2891_v42, %v2891_v42  ;;  %v2959_v11 = vmul.f32 %v1295_v36, %v2916_v18  ;;  %v2963_v13 = vmul.f32 %v2936_v37, %v2936_v37 }
 0x290   :  { %v1340_v56 = vmul.f32 %v1308_v20, %v2891_v42  ;;  %v2952_v20 = vpop.f32.mrf.mxu1 }
 0x292   :  { %v1372_v38 = vmul.f32 0.044715, %v1340_v56  ;;  %v1403_v56 = vadd.f32 %v1371_v6, %v2893_v9 }
 0x293   :  { %v1241_v4 = vpop.f32.mrf.mxu2 }
 0x294   :  { %v2913_v63 = vadd.f32 %v1241_v4, %v1129_v44  ;;  %v1096_v44 = vadd.f32 %v2765_v58, %v927_v60  ;;  %v1302_v58 = vmul.f32 %v2861_v43, %v2861_v43  ;;  %v1336_v60 = vmul.f32 %v1304_v30, %v2920_v15 }
 0x295   :  { %v1404_v4 = vadd.f32 %v1372_v38, %v2891_v42  ;;  %v1435_v6 = vmul.f32 0.7978846, %v1403_v56  ;;  %v1296_v56 = vmul.f32 %v2974_v25, %v2974_v25 }
 0x296   :  { %v1309_v26 = vmul.f32 %v2913_v63, %v2913_v63  ;;  %v2985_v36 = vadd.f32 %v2827_v62, %v1096_v44  ;;  %v1334_v12 = vmul.f32 %v1302_v58, %v2861_v43  ;;  %v1368_v30 = vmul.f32 0.044715, %v1336_v60 }
 0x297   :  { %v1436_v55 = vmul.f32 0.7978846, %v1404_v4  ;;  %v1332_v58 = vmul.f32 %v1300_v40, %v2851_v53 }
 0x298   :  { %v1341_v22 = vmul.f32 %v1309_v26, %v2913_v63  ;;  %v992_v26 = vpop.permute.xlu0 %991  ;;  %v1366_v60 = vmul.f32 0.044715, %v1334_v12  ;;  %v1400_v4 = vadd.f32 %v1368_v30, %v2920_v15 }
 0x299   :  { %v1364_v30 = vmul.f32 0.044715, %v1332_v58 }
 0x29a   :  { %v1373_v48 = vmul.f32 0.044715, %v1341_v22 }
 0x29b   :  { %v1244_v52 = vpop.f32.mrf.mxu2 }
 0x29c   :  { %v1405_v59 = vadd.f32 %v1373_v48, %v2913_v63  ;;  %v2955_v23 = vadd.f32 %v1244_v52, %v1132_v41  ;;  %v1135_v41 = vadd.f32 %v2883_v7, %v992_v26  ;;  %v1299_v48 = vmul.f32 %v2841_v33, %v2841_v33 }
 0x29d   :  { %v1401_v52 = vadd.f32 %v1369_v50, %v2911_v57  ;;  %v3000_v7 = vadd.f32 %v2896_v24, %v1174_v3  ;;  %v1297_v24 = vmul.f32 %v2981_v0, %v2981_v0  ;;  %v1365_v26 = vmul.f32 0.044715, %v1333_v51 }
 0x29e   :  { %v1310_v31 = vmul.f32 %v2955_v23, %v2955_v23  ;;  %v1437_v22 = vmul.f32 0.7978846, %v1405_v59  ;;  %v1298_v59 = vmul.f32 %v2985_v36, %v2985_v36  ;;  %v1331_v3 = vmul.f32 %v1299_v48, %v2841_v33 }
 0x29f   :  { %v1399_v50 = vadd.f32 %v1367_v61, %v2866_v45  ;;  %v1324_v40 = vmul.f32 %v3000_v7, %v3000_v7  ;;  %v1432_v48 = vmul.f32 0.7978846, %v1400_v4  ;;  %v1328_v51 = vmul.f32 %v1296_v56, %v2974_v25 }
 0x2a0   :  { %v1342_v46 = vmul.f32 %v1310_v31, %v2955_v23  ;;  %1800 = vtanh.f32 %v1437_v22  ;;  %v3006_v31 = vpop.f32.mrf.mxu1  ;;  %v997_v22 = vpop.permute.xlu2 %996  ;;  %v1330_v12 = vmul.f32 %v1298_v59, %v2985_v36  ;;  %v1329_v61 = vmul.f32 %v1297_v24, %v2981_v0 }
 0x2a1   :  { %1802 = vtanh.f32 %v1436_v55  ;;  %v1138_v55 = vadd.f32 %v2900_v21, %v997_v22  ;;  %v1431_v58 = vmul.f32 0.7978846, %v1399_v50  ;;  %v1360_v24 = vmul.f32 0.044715, %v1328_v51 }
 0x2a2   :  { %v1374_v38 = vmul.f32 0.044715, %v1342_v46  ;;  %1804 = vtanh.f32 %v1435_v6  ;;  %v1433_v46 = vmul.f32 0.7978846, %v1401_v52  ;;  %v1363_v6 = vmul.f32 0.044715, %v1331_v3 }
 0x2a3   :  { %v1247_v62 = vpop.f32.mrf.mxu2 }
 0x2a4   :  { %v1406_v44 = vadd.f32 %v1374_v38, %v2955_v23  ;;  %v2997_v39 = vadd.f32 %v1247_v62, %v1135_v41  ;;  %v3017_v41 = vadd.f32 %v1292_v19, %v1180_v2  ;;  %v1398_v38 = vadd.f32 %v1366_v60, %v2861_v43 }
 0x2a5   :  { %v3025_v62 = vadd.f32 %v2949_v49, %v2944_v34  ;;  %v1359_v60 = vmul.f32 0.044715, %v2959_v11  ;;  %v1356_v19 = vmul.f32 %v1324_v40, %v3000_v7  ;;  %v1362_v49 = vmul.f32 0.044715, %v1330_v12 }
 0x2a6   :  { %3191 = vst [vmem:[#allocation4_spill] sm:$0xff] %v2997_v39  ;;  %v1438_v28 = vmul.f32 0.7978846, %v1406_v44  ;;  %v1801_v29 = vpop.eup %1800  ;;  %v1397_v44 = vadd.f32 %v1365_v26, %v2856_v47  ;;  %v1326_v4 = vmul.f32 %v3017_v41, %v3017_v41  ;;  %v1430_v56 = vmul.f32 0.7978846, %v1398_v38 }
 0x2a7   :  { %v1803_v2 = vpop.eup %1802  ;;  %v1325_v3 = vmul.f32 %v3025_v62, %v3025_v62  ;;  %v1361_v11 = vmul.f32 0.044715, %v1329_v61  ;;  %v1395_v22 = vadd.f32 %v1363_v6, %v2841_v33 }
 0x2a8   :  { %1806 = vtanh.f32 %v1438_v28  ;;  %v1805_v21 = vpop.eup %1804  ;;  %v1501_v28 = vadd.f32 1.0, %v1801_v29  ;;  %v1500_v50 = vadd.f32 1.0, %v1803_v2  ;;  %v3038_v40 = vpop.f32.mrf.mxu1  ;;  %v1429_v29 = vmul.f32 0.7978846, %v1397_v44 }
 0x2a9   :  { %1808 = vtanh.f32 %v1434_v27  ;;  %v1396_v27 = vadd.f32 %v1364_v30, %v2851_v53  ;;  %v1358_v12 = vmul.f32 %v1326_v4, %v3017_v41  ;;  %v1499_v38 = vadd.f32 1.0, %v1805_v21 }
 0x2aa   :  { %1810 = vtanh.f32 %v1433_v46  ;;  %v1394_v2 = vadd.f32 %v1362_v49, %v2985_v36  ;;  %v1357_v61 = vmul.f32 %v1325_v3, %v3025_v62  ;;  %v1427_v4 = vmul.f32 0.7978846, %v1395_v22 }
 0x2ab   :  { %v1250_v52 = vpop.f32.mrf.mxu2  ;;  %1812 = vtanh.f32 %v1432_v48  ;;  %v1533_v48 = vmul.f32 0.5, %v1501_v28  ;;  %v1393_v21 = vadd.f32 %v1361_v11, %v2981_v0  ;;  %v1390_v28 = vmul.f32 0.044715, %v1358_v12 }
 0x2ac   :  { %v3028_v59 = vadd.f32 %v1250_v52, %v1138_v55  ;;  %1814 = vtanh.f32 %v1431_v58  ;;  %v1002_v55 = vpop.permute.xlu1 %1001  ;;  %v1532_v58 = vmul.f32 0.5, %v1500_v50  ;;  %v1355_v3 = vmul.f32 %v2963_v13, %v2936_v37 }
 0x2ad   :  { %v1141_v52 = vadd.f32 %v2952_v20, %v1002_v55  ;;  %1816 = vtanh.f32 %v1430_v56  ;;  %v1565_v20 = vmul.f32 %v1533_v48, %v2913_v63  ;;  %v1389_v50 = vmul.f32 0.044715, %v1357_v61 }
 0x2ae   :  { %3192 = vst [vmem:[#allocation5_spill] sm:$0xff] %v3028_v59  ;;  %v1807_v34 = vpop.eup %1806  ;;  %1818 = vtanh.f32 %v1429_v29  ;;  %v1425_v63 = vmul.f32 0.7978846, %v1393_v21  ;;  %v1391_v55 = vadd.f32 %v1359_v60, %v2916_v18  ;;  %v1422_v12 = vadd.f32 %v1390_v28, %v3017_v41 }
 0x2af   :  { %v1502_v26 = vadd.f32 1.0, %v1807_v34  ;;  %v1809_v46 = vpop.eup %1808  ;;  %v1428_v34 = vmul.f32 0.7978846, %v1396_v27  ;;  %v1531_v27 = vmul.f32 0.5, %v1499_v38  ;;  %v1387_v38 = vmul.f32 0.044715, %v1355_v3 }
 0x2b0   :  { %v1811_v51 = vpop.eup %1810  ;;  %v1498_v44 = vadd.f32 1.0, %v1809_v46  ;;  %v1564_v46 = vmul.f32 %v1532_v58, %v2891_v42  ;;  %v1144_v42 = vadd.f32 %v3006_v31, %v2918_v10  ;;  %v1423_v58 = vmul.f32 0.7978846, %v1391_v55 }
 0x2b1   :  { %v1534_v30 = vmul.f32 0.5, %v1502_v26  ;;  %v1813_v59 = vpop.eup %1812  ;;  %v1497_v49 = vadd.f32 1.0, %v1811_v51  ;;  %1820 = vtanh.f32 %v1428_v34  ;;  %v1392_v26 = vadd.f32 %v1360_v24, %v2974_v25  ;;  %v3058_v51 = vpop.f32.mrf.mxu1 }
 0x2b2   :  { %v1815_v56 = vpop.eup %1814  ;;  %v1530_v22 = vmul.f32 0.5, %v1498_v44  ;;  %v1496_v11 = vadd.f32 1.0, %v1813_v59  ;;  %1822 = vtanh.f32 %v1427_v4  ;;  %v1563_v13 = vmul.f32 %v1531_v27, %v2893_v9 }
 0x2b3   :  { %v1253_v6 = vpop.f32.mrf.mxu2  ;;  %v1566_v39 = vmul.f32 %v1534_v30, %v2955_v23  ;;  %v1426_v23 = vmul.f32 0.7978846, %v1394_v2  ;;  %v1817_v29 = vpop.eup %1816  ;;  %v1529_v30 = vmul.f32 0.5, %v1497_v49  ;;  %v1495_v48 = vadd.f32 1.0, %v1815_v56 }
 0x2b4   :  { %v3045_v1 = vadd.f32 %v1253_v6, %v1141_v52  ;;  %v1819_v24 = vpop.eup %1818  ;;  %v1424_v59 = vmul.f32 0.7978846, %v1392_v26  ;;  %v1562_v60 = vmul.f32 %v1530_v22, %v2902_v35  ;;  %v1528_v34 = vmul.f32 0.5, %v1496_v11 }
 0x2b5   :  { %1591 = vmatpush.msrb.mxu3 %v1566_v39  ;;  %v1388_v39 = vmul.f32 0.044715, %v1356_v19  ;;  %1824 = vtanh.f32 %v1426_v23  ;;  %v1421_v19 = vadd.f32 %v1389_v50, %v3025_v62  ;;  %v1494_v2 = vadd.f32 1.0, %v1817_v29 }
 0x2b6   :  { %1826 = vtanh.f32 %v1425_v63  ;;  %v1454_v10 = vmul.f32 0.7978846, %v1422_v12  ;;  %v1561_v31 = vmul.f32 %v1529_v30, %v2911_v57  ;;  %v1527_v44 = vmul.f32 0.5, %v1495_v48 }
 0x2b7   :  { %1592 = vmatpush.msrb.mxu3 %v1565_v20  ;;  %v1821_v9 = vpop.eup %1820  ;;  %v1420_v61 = vadd.f32 %v1388_v39, %v3000_v7  ;;  %v1493_v4 = vadd.f32 1.0, %v1819_v24  ;;  %v1419_v28 = vadd.f32 %v1387_v38, %v2936_v37  ;;  %1828 = vtanh.f32 %v1424_v59 }
 0x2b8   :  { %v1823_v21 = vpop.eup %1822  ;;  %v1560_v35 = vmul.f32 %v1528_v34, %v2920_v15  ;;  %v1526_v20 = vmul.f32 0.5, %v1494_v2  ;;  %v1492_v27 = vadd.f32 1.0, %v1821_v9  ;;  %v1453_v49 = vmul.f32 0.7978846, %v1421_v19 }
 0x2b9   :  { %1593 = vmatpush.msrb.mxu3 %v1564_v46  ;;  %1830 = vtanh.f32 %v1423_v58  ;;  %v1452_v3 = vmul.f32 0.7978846, %v1420_v61  ;;  %v1559_v23 = vmul.f32 %v1527_v44, %v2866_v45  ;;  %v1525_v57 = vmul.f32 0.5, %v1493_v4  ;;  %v1152_v55 = vpop.f32.mrf.mxu1 }
 0x2ba   :  { %1832 = vtanh.f32 %v1454_v10  ;;  %v1491_v26 = vadd.f32 1.0, %v1823_v21  ;;  %v1147_v46 = vadd.f32 %v3038_v40, %v2971_v17  ;;  %v1451_v22 = vmul.f32 0.7978846, %v1419_v28 }
 0x2bb   :  { %v1256_v52 = vpop.f32.mrf.mxu2  ;;  %1594 = vmatpush.msrb.mxu3 %v1563_v13  ;;  %v1825_v56 = vpop.eup %1824  ;;  %v1558_v15 = vmul.f32 %v1526_v20, %v2861_v43  ;;  %v1524_v29 = vmul.f32 0.5, %v1492_v27  ;;  %1834 = vtanh.f32 %v1453_v49  ;;  %v1557_v45 = vmul.f32 %v1525_v57, %v2856_v47 }
 0x2bc   :  { %v3063_v6 = vadd.f32 %v1256_v52, %v1144_v42  ;;  %v1827_v50 = vpop.eup %1826  ;;  %v1490_v39 = vadd.f32 1.0, %v1825_v56  ;;  %v1523_v13 = vmul.f32 0.5, %v1491_v26  ;;  %1836 = vtanh.f32 %v1452_v3 }
 0x2bd   :  { %1595 = vmatpush.msrb.mxu3 %v1562_v60  ;;  %v1829_v63 = vpop.eup %1828  ;;  %v1489_v30 = vadd.f32 1.0, %v1827_v50  ;;  %v1556_v40 = vmul.f32 %v1524_v29, %v2851_v53  ;;  %1838 = vtanh.f32 %v1451_v22  ;;  %v1153_v22 = vadd.f32 %v1152_v55, %v2881_v32 }
 0x2be   :  { %v1522_v24 = vmul.f32 0.5, %v1490_v39  ;;  %v1488_v43 = vadd.f32 1.0, %v1829_v63  ;;  %v1555_v42 = vmul.f32 %v1523_v13, %v2841_v33 }
 0x2bf   :  { %1596 = vmatpush.msrb.mxu3 %v1561_v31  ;;  %v1831_v48 = vpop.eup %1830  ;;  %v1521_v59 = vmul.f32 0.5, %v1489_v30  ;;  %v3193_v30 = vld [vmem:[#allocation3_spill] sm:$0xff] }
 0x2c0   :  { %v1833_v17 = vpop.eup %1832  ;;  %v1487_v19 = vadd.f32 1.0, %v1831_v48  ;;  %v1554_v34 = vmul.f32 %v1522_v24, %v2985_v36  ;;  %v1520_v2 = vmul.f32 0.5, %v1488_v43 }
 0x2c1   :  { %1597 = vmatpush.msrb.mxu3 %v1560_v35  ;;  %v1835_v38 = vpop.eup %1834  ;;  %v1518_v52 = vadd.f32 1.0, %v1833_v17  ;;  %v1553_v53 = vmul.f32 %v1521_v59, %v2981_v0  ;;  %v1155_v10 = vpop.f32.mrf.mxu1 }
 0x2c2   :  { %v1837_v60 = vpop.eup %1836  ;;  %v1517_v9 = vadd.f32 1.0, %v1835_v38  ;;  %v1519_v58 = vmul.f32 0.5, %v1487_v19  ;;  %v1552_v33 = vmul.f32 %v1520_v2, %v2974_v25 }
 0x2c3   :  { %v1259_v11 = vpop.f32.mrf.mxu2  ;;  %1598 = vmatpush.msrb.mxu3 %v1559_v23  ;;  %v1839_v61 = vpop.eup %1838  ;;  %v1550_v31 = vmul.f32 0.5, %v1518_v52  ;;  %v1516_v44 = vadd.f32 1.0, %v1837_v60 }
 0x2c4   :  { %v3072_v12 = vadd.f32 %v1259_v11, %v1147_v46  ;;  %v1549_v4 = vmul.f32 0.5, %v1517_v9  ;;  %v1515_v21 = vadd.f32 1.0, %v1839_v61  ;;  %v1551_v28 = vmul.f32 %v1519_v58, %v2916_v18 }
 0x2c5   :  { %1599 = vmatpush.msrb.mxu3 %v1558_v15  ;;  %v1582_v36 = vmul.f32 %v1550_v31, %v3017_v41  ;;  %v1548_v35 = vmul.f32 0.5, %v1516_v44 }
 0x2c6   :  { %v1581_v0 = vmul.f32 %v1549_v4, %v3025_v62  ;;  %v1547_v27 = vmul.f32 0.5, %v1515_v21  ;;  %v1315_v38 = vmul.f32 %v3072_v12, %v3072_v12  ;;  %v3194_v4 = vld [vmem:[#allocation5_spill] sm:$0xff] }
 0x2c7   :  { %1600 = vmatpush.msrb.mxu3 %v1557_v45  ;;  %v1580_v49 = vmul.f32 %v1548_v35, %v3000_v7  ;;  %v1156_v7 = vadd.f32 %v1155_v10, %v2885_v54  ;;  %v1312_v21 = vmul.f32 %v3194_v4, %v3194_v4 }
 0x2c8   :  { %v1579_v25 = vmul.f32 %v1547_v27, %v2936_v37  ;;  %v1347_v58 = vmul.f32 %v1315_v38, %v3072_v12  ;;  %v3195_v27 = vld [vmem:[#allocation4_spill] sm:$0xff] }
 0x2c9   :  { %1601 = vmatpush.msrb.mxu3 %v1556_v40  ;;  %v1158_v56 = vpop.f32.mrf.mxu1 }
 0x2ca   :  { %v1159_v50 = vadd.f32 %v1158_v56, %v2879_v16  ;;  %v1150_v16 = vadd.f32 %v3058_v51, %v2887_v8 }
 0x2cb   :  { %v1262_v47 = vpop.f32.mrf.mxu2  ;;  %1602 = vmatpush.msrb.mxu3 %v1555_v42 }
 0x2cc   :  { %v3106_v32 = vadd.f32 %v1262_v47, %v1150_v16  ;;  %v1314_v47 = vmul.f32 %v3063_v6, %v3063_v6 }
 0x2cd   :  { %1603 = vmatpush.msrb.mxu3 %v1554_v34 }
 0x2ce   :  { %v1316_v17 = vmul.f32 %v3106_v32, %v3106_v32 }
 0x2cf   :  { %1604 = vmatpush.msrb.mxu3 %v1553_v53  ;;  %v1313_v53 = vmul.f32 %v3045_v1, %v3045_v1 }
 0x2d0   :  { %v1348_v34 = vmul.f32 %v1316_v17, %v3106_v32 }
 0x2d1   :  { %1605 = vmatpush.msrb.mxu3 %v1552_v33  ;;  %v1161_v23 = vpop.f32.mrf.mxu1  ;;  %v1345_v56 = vmul.f32 %v1313_v53, %v3045_v1 }
 0x2d2   :  { %v1162_v41 = vadd.f32 %v1161_v23, %v2874_v14  ;;  %v3148_v23 = vld [vmem:[%s3185_s5] sm:$0x3] }
 0x2d3   :  { %v1265_v20 = vpop.f32.mrf.mxu2  ;;  %1606 = vmatpush.msrb.mxu3 %v1551_v28  ;;  %v1346_v28 = vmul.f32 %v1314_v47, %v3063_v6 }
 0x2d4   :  { %v3102_v39 = vadd.f32 %v1265_v20, %v1153_v22 }
 0x2d5   :  { %1611 = vmatpush.msra.mxu3 %v1582_v36  ;;  %v1380_v36 = vmul.f32 0.044715, %v1348_v34 }
 0x2d6   :  { %v1317_v8 = vmul.f32 %v3102_v39, %v3102_v39 }
 0x2d7   :  { %1612 = vmatpush.msra.mxu3 %v1581_v0 }
 0x2d8   :  { %v1349_v19 = vmul.f32 %v1317_v8, %v3102_v39 }
 0x2d9   :  { %1613 = vmatpush.msra.mxu3 %v1580_v49  ;;  %v1164_v26 = vpop.f32.mrf.mxu1  ;;  %v1311_v49 = vmul.f32 %v3195_v27, %v3195_v27 }
 0x2da   :  { %v1165_v37 = vadd.f32 %v1164_v26, %v2825_v5  ;;  %v1381_v31 = vmul.f32 0.044715, %v1349_v19  ;;  %v1344_v26 = vmul.f32 %v1312_v21, %v3194_v4 }
 0x2db   :  { %1614 = vmatpush.msra.mxu3 %v1579_v25  ;;  %v1268_v3 = vpop.f32.mrf.mxu2  ;;  %v1379_v25 = vmul.f32 0.044715, %v1347_v58 }
 0x2dc   :  { %v3094_v11 = vadd.f32 %v1268_v3, %v1156_v7  ;;  %v1412_v7 = vadd.f32 %v1380_v36, %v3106_v32 }
 0x2de   :  { %v1318_v5 = vmul.f32 %v3094_v11, %v3094_v11 }
 0x2e0   :  { %v1350_v40 = vmul.f32 %v1318_v5, %v3094_v11  ;;  %v1376_v5 = vmul.f32 0.044715, %v1344_v26 }
 0x2e1   :  { %v1167_v54 = vpop.f32.mrf.mxu1 }
 0x2e2   :  { %v1168_v48 = vadd.f32 %v1167_v54, %v3193_v30  ;;  %v1382_v2 = vmul.f32 0.044715, %v1350_v40 }
 0x2e3   :  { %v1271_v18 = vpop.f32.mrf.mxu2 }
 0x2e4   :  { %v3089_v62 = vadd.f32 %v1271_v18, %v1159_v50  ;;  %v1414_v35 = vadd.f32 %v1382_v2, %v3094_v11  ;;  %v1413_v18 = vadd.f32 %v1381_v31, %v3102_v39  ;;  %v1378_v50 = vmul.f32 0.044715, %v1346_v28 }
 0x2e6   :  { %v1319_v14 = vmul.f32 %v3089_v62, %v3089_v62  ;;  %v1445_v16 = vmul.f32 0.7978846, %v1413_v18 }
 0x2e8   :  { %v1351_v13 = vmul.f32 %v1319_v14, %v3089_v62  ;;  %v1377_v14 = vmul.f32 0.044715, %v1345_v56 }
 0x2ea   :  { %v1383_v42 = vmul.f32 0.044715, %v1351_v13 }
 0x2eb   :  { %v1274_v57 = vpop.f32.mrf.mxu2 }
 0x2ec   :  { %v3087_v46 = vadd.f32 %v1274_v57, %v1162_v41  ;;  %v1415_v10 = vadd.f32 %v1383_v42, %v3089_v62  ;;  %v1587_v41 = vperm.slane %v3148_v23, 0 }
 0x2ee   :  { %v1320_v15 = vmul.f32 %v3087_v46, %v3087_v46  ;;  %v1447_v3 = vmul.f32 0.7978846, %v1415_v10  ;;  %1607 = vmatmul.f32.vlgmr.msrb.gmra.mxu3 %v1587_v41 }
 0x2f0   :  { %v1352_v55 = vmul.f32 %v1320_v15, %v3087_v46  ;;  %v1343_v15 = vmul.f32 %v1311_v49, %v3195_v27 }
 0x2f2   :  { %v1384_v24 = vmul.f32 0.044715, %v1352_v55  ;;  %v1410_v55 = vadd.f32 %v1378_v50, %v3063_v6  ;;  %v1375_v8 = vmul.f32 0.044715, %v1343_v15 }
 0x2f3   :  { %v1277_v29 = vpop.f32.mrf.mxu2 }
 0x2f4   :  { %v3104_v63 = vadd.f32 %v1277_v29, %v1165_v37  ;;  %v1416_v9 = vadd.f32 %v1384_v24, %v3087_v46  ;;  %v1446_v37 = vmul.f32 0.7978846, %v1414_v35  ;;  %v1411_v29 = vadd.f32 %v1379_v25, %v3072_v12 }
 0x2f5   :  { %v1408_v24 = vadd.f32 %v1376_v5, %v3194_v4  ;;  %v1407_v19 = vadd.f32 %v1375_v8, %v3195_v27 }
 0x2f6   :  { %v1321_v45 = vmul.f32 %v3104_v63, %v3104_v63  ;;  %v1448_v0 = vmul.f32 0.7978846, %v1416_v9  ;;  %v1443_v30 = vmul.f32 0.7978846, %v1411_v29 }
 0x2f8   :  { %v1353_v51 = vmul.f32 %v1321_v45, %v3104_v63  ;;  %v1444_v45 = vmul.f32 0.7978846, %v1412_v7 }
 0x2fa   :  { %v1385_v43 = vmul.f32 0.044715, %v1353_v51  ;;  %v1409_v51 = vadd.f32 %v1377_v14, %v3045_v1 }
 0x2fb   :  { %v1280_v59 = vpop.f32.mrf.mxu2 }
 0x2fc   :  { %v1417_v52 = vadd.f32 %v1385_v43, %v3104_v63  ;;  %v3125_v60 = vadd.f32 %v1280_v59, %v1168_v48  ;;  %v1442_v43 = vmul.f32 0.7978846, %v1410_v55 }
 0x2fe   :  { %v1322_v61 = vmul.f32 %v3125_v60, %v3125_v60  ;;  %v1449_v33 = vmul.f32 0.7978846, %v1417_v52  ;;  %v1441_v52 = vmul.f32 0.7978846, %v1409_v51 }
 0x300   :  { %v1354_v44 = vmul.f32 %v1322_v61, %v3125_v60  ;;  %1840 = vtanh.f32 %v1449_v33  ;;  %v1440_v61 = vmul.f32 0.7978846, %v1408_v24 }
 0x301   :  { %1842 = vtanh.f32 %v1448_v0 }
 0x302   :  { %v1386_v20 = vmul.f32 0.044715, %v1354_v44  ;;  %1844 = vtanh.f32 %v1447_v3  ;;  %v1439_v44 = vmul.f32 0.7978846, %v1407_v19 }
 0x304   :  { %v1418_v57 = vadd.f32 %v1386_v20, %v3125_v60 }
 0x306   :  { %v1450_v22 = vmul.f32 0.7978846, %v1418_v57  ;;  %v1841_v54 = vpop.eup %1840 }
 0x307   :  { %v1843_v13 = vpop.eup %1842  ;;  %v1513_v17 = vadd.f32 1.0, %v1841_v54 }
 0x308   :  { %1846 = vtanh.f32 %v1450_v22  ;;  %v1845_v48 = vpop.eup %1844  ;;  %v1512_v42 = vadd.f32 1.0, %v1843_v13 }
 0x309   :  { %1848 = vtanh.f32 %v1446_v37  ;;  %v1545_v34 = vmul.f32 0.5, %v1513_v17  ;;  %v1511_v2 = vadd.f32 1.0, %v1845_v48 }
 0x30a   :  { %1850 = vtanh.f32 %v1445_v16  ;;  %v1544_v58 = vmul.f32 0.5, %v1512_v42 }
 0x30b   :  { %1852 = vtanh.f32 %v1444_v45  ;;  %v1577_v33 = vmul.f32 %v1545_v34, %v3104_v63  ;;  %v1543_v21 = vmul.f32 0.5, %v1511_v2 }
 0x30c   :  { %1854 = vtanh.f32 %v1443_v30  ;;  %v1576_v35 = vmul.f32 %v1544_v58, %v3087_v46 }
 0x30d   :  { %1856 = vtanh.f32 %v1442_v43 }
 0x30e   :  { %v1847_v40 = vpop.eup %1846  ;;  %1858 = vtanh.f32 %v1441_v52 }
 0x30f   :  { %v1514_v38 = vadd.f32 1.0, %v1847_v40  ;;  %v1849_v59 = vpop.eup %1848  ;;  %1860 = vtanh.f32 %v1440_v61 }
 0x310   :  { %v1851_v9 = vpop.eup %1850  ;;  %v1510_v10 = vadd.f32 1.0, %v1849_v59  ;;  %1862 = vtanh.f32 %v1439_v44 }
 0x311   :  { %v1546_v47 = vmul.f32 0.5, %v1514_v38  ;;  %v1853_v31 = vpop.eup %1852  ;;  %v1509_v28 = vadd.f32 1.0, %v1851_v9 }
 0x312   :  { %v1855_v36 = vpop.eup %1854  ;;  %v1542_v20 = vmul.f32 0.5, %v1510_v10  ;;  %v1508_v0 = vadd.f32 1.0, %v1853_v31 }
 0x313   :  { %v1578_v53 = vmul.f32 %v1546_v47, %v3125_v60  ;;  %v1857_v49 = vpop.eup %1856  ;;  %v1575_v60 = vmul.f32 %v1543_v21, %v3089_v62  ;;  %v1541_v56 = vmul.f32 0.5, %v1509_v28  ;;  %v1507_v25 = vadd.f32 1.0, %v1855_v36 }
 0x314   :  { %v1859_v3 = vpop.eup %1858  ;;  %v1574_v63 = vmul.f32 %v1542_v20, %v3094_v11  ;;  %v1540_v18 = vmul.f32 0.5, %v1508_v0  ;;  %v1506_v57 = vadd.f32 1.0, %v1857_v49 }
 0x315   :  { %1615 = vmatpush.msra.mxu3 %v1578_v53  ;;  %v1861_v41 = vpop.eup %1860  ;;  %v1573_v26 = vmul.f32 %v1541_v56, %v3102_v39  ;;  %v1539_v46 = vmul.f32 0.5, %v1507_v25  ;;  %v1505_v50 = vadd.f32 1.0, %v1859_v3 }
 0x316   :  { %v1863_v7 = vpop.eup %1862  ;;  %v1572_v22 = vmul.f32 %v1540_v18, %v3106_v32  ;;  %v1538_v37 = vmul.f32 0.5, %v1506_v57  ;;  %v1504_v62 = vadd.f32 1.0, %v1861_v41  ;;  %v1588_v32 = vperm.slane %v3148_v23, 1 }
 0x317   :  { %1616 = vmatpush.msra.mxu3 %v1577_v33  ;;  %v1571_v15 = vmul.f32 %v1539_v46, %v3072_v12  ;;  %v1537_v14 = vmul.f32 0.5, %v1505_v50  ;;  %v1503_v29 = vadd.f32 1.0, %v1863_v7 }
 0x318   :  { %v1570_v11 = vmul.f32 %v1538_v37, %v3063_v6  ;;  %v1536_v16 = vmul.f32 0.5, %v1504_v62  ;;  %v1585_v6 = vstv %s3186_s6 }
 0x319   :  { %1617 = vmatpush.msra.mxu3 %v1576_v35  ;;  %v1569_v39 = vmul.f32 %v1537_v14, %v3045_v1  ;;  %v1535_v54 = vmul.f32 0.5, %v1503_v29 }
 0x31a   :  { %v1568_v5 = vmul.f32 %v1536_v16, %v3194_v4 }
 0x31b   :  { %1618 = vmatpush.msra.mxu3 %v1575_v60  ;;  %v1567_v55 = vmul.f32 %v1535_v54, %v3195_v27 }
 0x31d   :  { %1619 = vmatpush.msra.mxu3 %v1574_v63 }
 0x31f   :  { %1620 = vmatpush.msra.mxu3 %v1573_v26 }
 0x321   :  { %1621 = vmatpush.msra.mxu3 %v1572_v22 }
 0x323   :  { %1622 = vmatpush.msra.mxu3 %v1571_v15 }
 0x325   :  { %1623 = vmatpush.msra.mxu3 %v1570_v11 }
 0x327   :  { %1624 = vmatpush.msra.mxu3 %v1569_v39 }
 0x329   :  { %1625 = vmatpush.msra.mxu3 %v1568_v5 }
 0x32b   :  { %1626 = vmatpush.msra.mxu3 %v1567_v55 }
 0x32c   :  { %1627 = vmatmul.f32.vlgmr.msra.gmra.mxu3 %v1588_v32 }
 0x371   :  { %v1608_v12 = vpop.f32.mrf.mxu3 }
 0x372   :  { %v1609_v45 = vadd.f32 %v1608_v12, %v1585_v6 }
 0x3af   :  { %v1628_v13 = vpop.f32.mrf.mxu3 }
 0x3b0   :  { %v1629_v8 = vadd.f32 %v1628_v13, %v1609_v45 }
 0x3b2   :  { %1631 = vst [vmem:[%s3187_s7] sm:$0x1] %v1629_v8 }

</bundles_post_ra>
